<compile_context>
chip_gen: v7x
topology: tpu7x:2x2x1
jax: 0.10.0
libtpu: 0.0.40
codegen_flags: <defaults>
</compile_context>

<pallas_src>
import functools

import jax
import jax.numpy as jnp
from jax.experimental import pallas as pl
from jax.experimental.pallas import tpu as pltpu


# ----------------------------------------------------------------------------
# Pallas kernel 1: fused GDL block
#   temporal conv (kernel kt, ReLU)  ->  Chebyshev graph conv (ReLU)
# Input  x : (B, T,  V, Cin)  channels-last, bf16
# Output y : (B, To, V, Cout) channels-last, bf16, To = T - (kt - 1)
# ----------------------------------------------------------------------------
def _gdl_block_kernel(x_ref, wt_ref, bt_ref, bd_ref, th_ref, bg_ref, o_ref):
    _, T, V, Cin = x_ref.shape
    Chid = wt_ref.shape[1]
    ks = bd_ref.shape[0]
    Cout = th_ref.shape[1]
    To = o_ref.shape[1]
    kt = T - To + 1
    M = To * V

    # --- temporal conv: unfold fused as kt shifted ref windows (no HBM unfold) ---
    acc = jnp.zeros((M, Chid), jnp.float32)
    if Cin <= 4:
        # degenerate-K matmul -> unrolled VPU outer products instead of the MXU
        wt_all = wt_ref[...].astype(jnp.float32)                       # (kt*Cin, Chid)
        for dt in range(kt):
            xs = x_ref[0, dt:dt + To, :, :].reshape(M, Cin).astype(jnp.float32)
            for c in range(Cin):
                row = dt * Cin + c
                acc = acc + xs[:, c:c + 1] * wt_all[row:row + 1, :]
    else:
        for dt in range(kt):
            xs = x_ref[0, dt:dt + To, :, :].reshape(M, Cin)            # bf16
            acc = acc + jnp.dot(xs, wt_ref[dt * Cin:(dt + 1) * Cin, :],
                                preferred_element_type=jnp.float32)
    h = jnp.maximum(acc + bt_ref[...], 0.0).astype(jnp.bfloat16)       # (M, Chid)

    # --- Chebyshev graph conv:  y = ReLU( sum_k BD_k @ (h @ theta_k) + bg ) ------
    # BD_k = kron(I_To, Lk[k]) applies Lk[k] over nodes for every time step, i.e.
    # the conventional sum_v Lk[k, u, v] * h[t, v, :].
    acc2 = jnp.zeros((M, Cout), jnp.float32)
    for k in range(ks):
        g = jnp.dot(h, th_ref[k * Chid:(k + 1) * Chid, :],
                    preferred_element_type=jnp.float32).astype(jnp.bfloat16)
        acc2 = acc2 + jnp.dot(bd_ref[k], g, preferred_element_type=jnp.float32)
    y = jnp.maximum(acc2 + bg_ref[...], 0.0)
    o_ref[...] = y.reshape(1, To, V, Cout).astype(o_ref.dtype)


def gdl_block(x, wt, bt, bd, theta, bg):
    """One fused GDL block. x: (B, T, V, Cin); bd: (ks, To*V, To*V)."""
    B, T, V, Cin = x.shape
    ks, MV, _ = bd.shape
    To = MV // V
    Chid = wt.shape[1]
    Cout = theta.shape[1]
    kt = wt.shape[0] // Cin

    return pl.pallas_call(
        _gdl_block_kernel,
        out_shape=jax.ShapeDtypeStruct((B, To, V, Cout), jnp.bfloat16),
        grid_spec=pltpu.PrefetchScalarGridSpec(
            num_scalar_prefetch=0,
            grid=(B,),
            in_specs=[
                pl.BlockSpec((1, T, V, Cin), lambda b: (b, 0, 0, 0)),
                pl.BlockSpec((kt * Cin, Chid), lambda b: (0, 0)),
                pl.BlockSpec((1, Chid), lambda b: (0, 0)),
                pl.BlockSpec((ks, To * V, To * V), lambda b: (0, 0, 0)),
                pl.BlockSpec((ks * Chid, Cout), lambda b: (0, 0)),
                pl.BlockSpec((1, Cout), lambda b: (0, 0)),
            ],
            out_specs=pl.BlockSpec((1, To, V, Cout), lambda b: (b, 0, 0, 0)),
        ),
        compiler_params=pltpu.CompilerParams(
            dimension_semantics=("parallel",)),
    )(x.astype(jnp.bfloat16),
      wt.astype(jnp.bfloat16),
      bt.reshape(1, Chid).astype(jnp.float32),
      bd.astype(jnp.bfloat16),
      theta.astype(jnp.bfloat16),
      bg.reshape(1, Cout).astype(jnp.float32))


def gdl_module(x, blocks, bds):
    # TODO(synk): GDL_Module source not provided; stand-in = per block
    # [ReLU temporal conv (kt) c_in->c_hid] + [Chebyshev graph conv c_hid->c_out],
    # matching the time reduction (kt-1)/block implied by GDLBE.__init__.
    for blk, bd in zip(blocks, bds):
        x = gdl_block(x, blk['wt'], blk['bt'], bd, blk['theta'], blk['bg'])
    return x


# ----------------------------------------------------------------------------
# Pallas kernel 2: fused output head
#   Global_fea_embed (1x1 conv + ReLU, time-broadcast folded into the weights)
#   + concat([st_x, st_be, em_gf]) + time-collapsing Cout=1 projection,
#   all computed as a VPU multiply/reduce (no N=1 MXU matmul, no materialized
#   fusion tensor).
# ----------------------------------------------------------------------------
def _output_head_kernel(sx_ref, sbe_ref, gf_ref, wemb_ref, bemb_ref,
                        wx_ref, wbe_ref, wg_ref, b_ref, o_ref):
    To = sx_ref.shape[1]
    V = sx_ref.shape[2]
    fc2 = gf_ref.shape[3]
    C = wemb_ref.shape[1]

    # Global_fea_embed: 1x1 conv fc2 -> out_c + ReLU (K=fc2 contraction on the VPU)
    gfv = gf_ref[0, 0].astype(jnp.float32)                    # (V, fc2)
    wemb = wemb_ref[...]                                      # (fc2, C) f32
    em = jnp.zeros((V, C), jnp.float32) + bemb_ref[...]
    for c in range(fc2):
        em = em + gfv[:, c:c + 1] * wemb[c:c + 1, :]
    em = jnp.maximum(em, 0.0)

    wx = wx_ref[...]                                          # (To, C)
    wbe = wbe_ref[...]                                        # (To, C)
    wg = wg_ref[...]                                          # (1,  C) time-summed
    tot = em * wg                                             # (V, C)
    for t in range(To):
        tot = tot + sx_ref[0, t].astype(jnp.float32) * wx[t:t + 1, :]
        tot = tot + sbe_ref[0, t].astype(jnp.float32) * wbe[t:t + 1, :]
    res = jnp.sum(tot, axis=1, keepdims=True) + b_ref[...]    # (V, 1)
    o_ref[...] = res.reshape(1, V, 1).astype(o_ref.dtype)


def output_head(st_x, st_be, gf, w_emb, b_emb, wx, wbe, wg_sum, bias):
    # TODO(synk): Output_time_conv source not provided; stand-in = linear map over
    # (out_timestep x 3*out_c) -> 1 per node (temporal conv with kernel=out_timestep).
    B, To, V, C = st_x.shape
    fc2 = gf.shape[-1]
    out = pl.pallas_call(
        _output_head_kernel,
        out_shape=jax.ShapeDtypeStruct((B, V, 1), jnp.float32),
        grid_spec=pltpu.PrefetchScalarGridSpec(
            num_scalar_prefetch=0,
            grid=(B,),
            in_specs=[
                pl.BlockSpec((1, To, V, C), lambda b: (b, 0, 0, 0)),
                pl.BlockSpec((1, To, V, C), lambda b: (b, 0, 0, 0)),
                pl.BlockSpec((1, 1, V, fc2), lambda b: (b, 0, 0, 0)),
                pl.BlockSpec((fc2, C), lambda b: (0, 0)),
                pl.BlockSpec((1, C), lambda b: (0, 0)),
                pl.BlockSpec((To, C), lambda b: (0, 0)),
                pl.BlockSpec((To, C), lambda b: (0, 0)),
                pl.BlockSpec((1, C), lambda b: (0, 0)),
                pl.BlockSpec((1, 1), lambda b: (0, 0)),
            ],
            out_specs=pl.BlockSpec((1, V, 1), lambda b: (b, 0, 0)),
        ),
        compiler_params=pltpu.CompilerParams(
            dimension_semantics=("parallel",)),
    )(st_x.astype(jnp.bfloat16), st_be.astype(jnp.bfloat16),
      gf.astype(jnp.float32),
      w_emb.astype(jnp.float32), b_emb.reshape(1, -1).astype(jnp.float32),
      wx.astype(jnp.float32), wbe.astype(jnp.float32),
      wg_sum.astype(jnp.float32), bias.astype(jnp.float32))
    return out.reshape(B, 1, 1, V)


# ----------------------------------------------------------------------------
# Host-side weight folding: pointwise conv (no activation) into the next
# temporal conv -> removes the Conv_sbe kernel entirely (exact, both linear).
# ----------------------------------------------------------------------------
def fold_pointwise_into_temporal(w_pre, b_pre, wt, bt, kt):
    """w_pre: (fc1, cin), b_pre: (cin,), wt: (kt*cin, chid) dt-major, bt: (chid,)."""
    fc1, cin = w_pre.shape
    chid = wt.shape[1]
    wt3 = wt.reshape(kt, cin, chid)
    wt_folded = jnp.einsum('pc,kch->kph', w_pre, wt3).reshape(kt * fc1, chid)
    bt_folded = bt + jnp.einsum('c,kch->h', b_pre, wt3)
    return wt_folded, bt_folded


# ----------------------------------------------------------------------------
# Deterministic parameter / graph-kernel construction
# ----------------------------------------------------------------------------
def build_cheb_lk(nodes, ks):
    idx = jnp.arange(nodes)
    diff = jnp.abs(idx[:, None] - idx[None, :])
    A = ((diff == 1) | (diff == nodes - 1)).astype(jnp.float32)   # ring graph
    d = A.sum(1)
    Dm = jnp.diag(1.0 / jnp.sqrt(d))
    L = jnp.eye(nodes) - Dm @ A @ Dm
    Lt = L - jnp.eye(nodes)            # scaled: 2L/lambda_max - I, lambda_max ~ 2
    cheb = [jnp.eye(nodes), Lt]
    for _ in range(2, ks):
        cheb.append(2.0 * Lt @ cheb[-1] - cheb[-2])
    return jnp.stack(cheb[:ks], axis=0)


def build_block_diag(Lk, To):
    """kron(I_To, Lk[k]) for each k -> (ks, To*V, To*V); applies Lk per time step."""
    ks, V, _ = Lk.shape
    eye = jnp.eye(To, dtype=Lk.dtype)
    bd = jnp.einsum('ij,kuv->kiujv', eye, Lk).reshape(ks, To * V, To * V)
    return bd


def build_block_diags(Lk, timesteps, kt, n_blocks):
    bds, T = [], timesteps
    for _ in range(n_blocks):
        To = T - (kt - 1)
        bds.append(build_block_diag(Lk, To))
        T = To
    return tuple(bds)


def init_params(key, timesteps, fea_channel, kt, ks):
    ch_iho_x = [[fea_channel[0], 64, 128], [128, 64, 16]]
    ch_iho_be = [[32, 64, 128], [128, 64, 16]]
    out_c = ch_iho_x[-1][-1]
    out_t = timesteps - (kt - 1) * len(ch_iho_x)

    keys = iter(jax.random.split(key, 64))

    def lin(cin, cout):
        w = jax.random.normal(next(keys), (cin, cout), jnp.float32) / jnp.sqrt(cin)
        b = jnp.zeros((cout,), jnp.float32)
        return w, b

    def gdl_blocks(ch_iho):
        blocks = []
        for cin, chid, cout in ch_iho:
            # TODO(synk): wt is flattened dt-major / cin-minor; porting real PyTorch
            # Conv2d weights (Cout, Cin, kt, 1) would need a permutation of this axis.
            wt, bt = lin(cin * kt, chid)
            th, bg = lin(chid * ks, cout)
            blocks.append(dict(wt=wt, bt=bt, theta=th, bg=bg))
        return blocks

    wo = jax.random.normal(next(keys), (out_t, out_c * 3), jnp.float32) \
        / jnp.sqrt(out_t * out_c * 3)
    bo = jnp.zeros((1, 1), jnp.float32)

    return {
        'conv_sbe': lin(fea_channel[1], 32),
        'gdl_x': gdl_blocks(ch_iho_x),
        'gdl_be': gdl_blocks(ch_iho_be),
        'eb_global': lin(fea_channel[2], out_c),
        'output': (wo, bo),
    }


# ----------------------------------------------------------------------------
# GDLBE forward (channels-last internally; single transpose at the boundary)
# ----------------------------------------------------------------------------
def gdlbe_forward(params, x, *, timesteps, fea_channel, kt, ks, bds):
    B, c, F, V = x.shape
    T = timesteps
    fc0, fc1, fc2 = fea_channel
    cut0, cut1 = T * fc0, T * fc1

    # split along F and convert NCHW -> channels-last once
    hist = x[:, 0, :cut0, :].reshape(B, fc0, T, V)
    hist = jnp.transpose(hist, (0, 2, 3, 1))                     # (B, T, V, fc0)
    be = x[:, 0, cut0:cut0 + cut1, :].reshape(B, fc1, T, V)
    be = jnp.transpose(be, (0, 2, 3, 1))                         # (B, T, V, fc1)
    gf = jnp.transpose(x[:, 0, F - fc2:, :], (0, 2, 1))          # (B, V, fc2)
    gf = gf.reshape(B, 1, V, fc2)                                # (B, 1, V, fc2)

    # GDL_x stream (one fused pallas_call per block)
    st_x = gdl_module(hist, params['gdl_x'], bds)                # (B, out_T, V, 16)

    # Conv_sbe (1x1 conv fc1 -> 32, no activation) folded into the first be block
    w_sbe, b_sbe = params['conv_sbe']
    be_blocks = list(params['gdl_be'])
    wt_f, bt_f = fold_pointwise_into_temporal(
        w_sbe, b_sbe, be_blocks[0]['wt'], be_blocks[0]['bt'], kt)
    be_blocks[0] = dict(wt=wt_f, bt=bt_f,
                        theta=be_blocks[0]['theta'], bg=be_blocks[0]['bg'])
    st_be = gdl_module(be, be_blocks, bds)                       # (B, out_T, V, 16)

    # TODO(synk): Global_fea_embed source not provided; stand-in = 1x1 conv
    # fc2 -> out_c + ReLU; it is fused (with its time broadcast) into the head.
    wg_emb, bg_emb = params['eb_global']

    # fused embed + concat + time-collapsing output projection
    out_c = st_x.shape[-1]
    wo, bo = params['output']                                    # (out_T, 3*out_c)
    wx = wo[:, :out_c]
    wbe = wo[:, out_c:2 * out_c]
    wg_sum = jnp.sum(wo[:, 2 * out_c:], axis=0, keepdims=True)   # time-broadcast folded
    out = output_head(st_x, st_be, gf, wg_emb, bg_emb, wx, wbe, wg_sum, bo)
    return out                                                   # (B, 1, 1, V) f32


# ----------------------------------------------------------------------------
if __name__ == "__main__":
    timesteps, nodes = 8, 8
    fea_channel = (1, 2, 3)
    kt, ks = 3, 3
    B = 2
    F = timesteps * fea_channel[0] + timesteps * fea_channel[1] + fea_channel[2]  # 27

    key = jax.random.PRNGKey(0)
    kx, kp = jax.random.split(key)
    x = jax.random.normal(kx, (B, 1, F, nodes), jnp.float32)

    Lk = build_cheb_lk(nodes, ks)
    bds = build_block_diags(Lk, timesteps, kt, n_blocks=2)
    params = init_params(kp, timesteps, fea_channel, kt, ks)

    fwd = jax.jit(functools.partial(
        gdlbe_forward, timesteps=timesteps, fea_channel=fea_channel,
        kt=kt, ks=ks, bds=bds))

    out = fwd(params, x)
    jax.block_until_ready(out)
    assert out.shape == (B, 1, 1, nodes), out.shape
    print("KERNEL_OK")
</pallas_src>

<mosaic_0001>
module attributes {stable_mosaic.version = 11 : i64} {
  func.func @_gdl_block_kernel(%arg0: i32, %arg1: memref<1x8x8x1xbf16, #tpu.memory_space<vmem>>, %arg2: memref<3x64xbf16, #tpu.memory_space<vmem>>, %arg3: memref<1x64xf32, #tpu.memory_space<vmem>>, %arg4: memref<3x48x48xbf16, #tpu.memory_space<vmem>>, %arg5: memref<192x128xbf16, #tpu.memory_space<vmem>>, %arg6: memref<1x128xf32, #tpu.memory_space<vmem>>, %arg7: memref<1x6x8x128xbf16, #tpu.memory_space<vmem>>) attributes {dimension_semantics = [#tpu.dimension_semantics<parallel>], iteration_bounds = array<i64: 2>, scalar_prefetch = 0 : i64, scratch_operands = 0 : i64, tpu.core_type = #tpu.core_type<tc>, window_params = [{transform_indices = @transform_0, window_bounds = array<i64: 1, 8, 8, 1>}, {pipeline_mode = #tpu.pipeline_mode<synchronous>, transform_indices = @transform_1, window_bounds = array<i64: 3, 64>}, {pipeline_mode = #tpu.pipeline_mode<synchronous>, transform_indices = @transform_2, window_bounds = array<i64: 1, 64>}, {pipeline_mode = #tpu.pipeline_mode<synchronous>, transform_indices = @transform_3, window_bounds = array<i64: 3, 48, 48>}, {pipeline_mode = #tpu.pipeline_mode<synchronous>, transform_indices = @transform_4, window_bounds = array<i64: 192, 128>}, {pipeline_mode = #tpu.pipeline_mode<synchronous>, transform_indices = @transform_5, window_bounds = array<i64: 1, 128>}, {transform_indices = @transform_6, window_bounds = array<i64: 1, 6, 8, 128>}]} {
    %cst = arith.constant 0.000000e+00 : f32
    %0 = vector.broadcast %cst : f32 to vector<48x64xf32>
    %c0 = arith.constant 0 : index
    %c0_0 = arith.constant 0 : index
    %1 = vector.load %arg2[%c0, %c0_0] : memref<3x64xbf16, #tpu.memory_space<vmem>>, vector<3x64xbf16>
    %2 = arith.extf %1 : vector<3x64xbf16> to vector<3x64xf32>
    %c0_1 = arith.constant 0 : index
    %c0_2 = arith.constant 0 : index
    %c0_3 = arith.constant 0 : index
    %c0_4 = arith.constant 0 : index
    %3 = vector.load %arg1[%c0_1, %c0_2, %c0_3, %c0_4] : memref<1x8x8x1xbf16, #tpu.memory_space<vmem>>, vector<1x6x8x1xbf16>
    %4 = vector.shape_cast %3 : vector<1x6x8x1xbf16> to vector<6x8x1xbf16>
    %5 = vector.shape_cast %4 : vector<6x8x1xbf16> to vector<48x1xbf16>
    %6 = arith.extf %5 : vector<48x1xbf16> to vector<48x1xf32>
    %7 = vector.extract_strided_slice %2 {offsets = [0, 0], sizes = [1, 64], strides = [1, 1]} : vector<3x64xf32> to vector<1x64xf32>
    %8 = vector.broadcast %6 : vector<48x1xf32> to vector<48x64xf32>
    %9 = vector.broadcast %7 : vector<1x64xf32> to vector<48x64xf32>
    %10 = arith.mulf %8, %9 : vector<48x64xf32>
    %11 = arith.addf %0, %10 : vector<48x64xf32>
    %c0_5 = arith.constant 0 : index
    %c1 = arith.constant 1 : index
    %c0_6 = arith.constant 0 : index
    %c0_7 = arith.constant 0 : index
    %12 = vector.load %arg1[%c0_5, %c1, %c0_6, %c0_7] : memref<1x8x8x1xbf16, #tpu.memory_space<vmem>>, vector<1x6x8x1xbf16>
    %13 = vector.shape_cast %12 : vector<1x6x8x1xbf16> to vector<6x8x1xbf16>
    %14 = vector.shape_cast %13 : vector<6x8x1xbf16> to vector<48x1xbf16>
    %15 = arith.extf %14 : vector<48x1xbf16> to vector<48x1xf32>
    %16 = vector.extract_strided_slice %2 {offsets = [1, 0], sizes = [1, 64], strides = [1, 1]} : vector<3x64xf32> to vector<1x64xf32>
    %17 = vector.broadcast %15 : vector<48x1xf32> to vector<48x64xf32>
    %18 = vector.broadcast %16 : vector<1x64xf32> to vector<48x64xf32>
    %19 = arith.mulf %17, %18 : vector<48x64xf32>
    %20 = arith.addf %11, %19 : vector<48x64xf32>
    %c0_8 = arith.constant 0 : index
    %c2 = arith.constant 2 : index
    %c0_9 = arith.constant 0 : index
    %c0_10 = arith.constant 0 : index
    %21 = vector.load %arg1[%c0_8, %c2, %c0_9, %c0_10] : memref<1x8x8x1xbf16, #tpu.memory_space<vmem>>, vector<1x6x8x1xbf16>
    %22 = vector.shape_cast %21 : vector<1x6x8x1xbf16> to vector<6x8x1xbf16>
    %23 = vector.shape_cast %22 : vector<6x8x1xbf16> to vector<48x1xbf16>
    %24 = arith.extf %23 : vector<48x1xbf16> to vector<48x1xf32>
    %25 = vector.extract_strided_slice %2 {offsets = [2, 0], sizes = [1, 64], strides = [1, 1]} : vector<3x64xf32> to vector<1x64xf32>
    %26 = vector.broadcast %24 : vector<48x1xf32> to vector<48x64xf32>
    %27 = vector.broadcast %25 : vector<1x64xf32> to vector<48x64xf32>
    %28 = arith.mulf %26, %27 : vector<48x64xf32>
    %29 = arith.addf %20, %28 : vector<48x64xf32>
    %c0_11 = arith.constant 0 : index
    %c0_12 = arith.constant 0 : index
    %30 = vector.load %arg3[%c0_11, %c0_12] : memref<1x64xf32, #tpu.memory_space<vmem>>, vector<1x64xf32>
    %31 = vector.broadcast %30 : vector<1x64xf32> to vector<48x64xf32>
    %32 = arith.addf %29, %31 : vector<48x64xf32>
    %cst_13 = arith.constant 0.000000e+00 : f32
    %33 = vector.broadcast %cst_13 : f32 to vector<48x64xf32>
    %34 = arith.maximumf %32, %33 : vector<48x64xf32>
    %35 = arith.truncf %34 : vector<48x64xf32> to vector<48x64xbf16>
    %cst_14 = arith.constant 0.000000e+00 : f32
    %36 = vector.broadcast %cst_14 : f32 to vector<48x128xf32>
    %c0_15 = arith.constant 0 : index
    %c0_16 = arith.constant 0 : index
    %37 = vector.load %arg5[%c0_15, %c0_16] : memref<192x128xbf16, #tpu.memory_space<vmem>>, vector<64x128xbf16>
    %cst_17 = arith.constant dense<0.000000e+00> : vector<48x128xf32>
    %38 = tpu.matmul %35, %37, %cst_17 {dimension_numbers = #tpu.dot_dimension_numbers<[1], [0], [0], [1], [0, 0, 1, 1], [], []>} : vector<48x64xbf16>, vector<64x128xbf16>, vector<48x128xf32> -> vector<48x128xf32>
    %39 = arith.truncf %38 : vector<48x128xf32> to vector<48x128xbf16>
    %c0_18 = arith.constant 0 : index
    %c0_19 = arith.constant 0 : index
    %c0_20 = arith.constant 0 : index
    %40 = vector.load %arg4[%c0_18, %c0_19, %c0_20] : memref<3x48x48xbf16, #tpu.memory_space<vmem>>, vector<1x48x48xbf16>
    %41 = vector.shape_cast %40 : vector<1x48x48xbf16> to vector<48x48xbf16>
    %cst_21 = arith.constant dense<0.000000e+00> : vector<48x128xf32>
    %42 = tpu.matmul %41, %39, %cst_21 {dimension_numbers = #tpu.dot_dimension_numbers<[1], [0], [0], [1], [0, 0, 1, 1], [], []>} : vector<48x48xbf16>, vector<48x128xbf16>, vector<48x128xf32> -> vector<48x128xf32>
    %43 = arith.addf %36, %42 : vector<48x128xf32>
    %c64 = arith.constant 64 : index
    %c0_22 = arith.constant 0 : index
    %44 = vector.load %arg5[%c64, %c0_22] : memref<192x128xbf16, #tpu.memory_space<vmem>>, vector<64x128xbf16>
    %cst_23 = arith.constant dense<0.000000e+00> : vector<48x128xf32>
    %45 = tpu.matmul %35, %44, %cst_23 {dimension_numbers = #tpu.dot_dimension_numbers<[1], [0], [0], [1], [0, 0, 1, 1], [], []>} : vector<48x64xbf16>, vector<64x128xbf16>, vector<48x128xf32> -> vector<48x128xf32>
    %46 = arith.truncf %45 : vector<48x128xf32> to vector<48x128xbf16>
    %c1_24 = arith.constant 1 : index
    %c0_25 = arith.constant 0 : index
    %c0_26 = arith.constant 0 : index
    %47 = vector.load %arg4[%c1_24, %c0_25, %c0_26] : memref<3x48x48xbf16, #tpu.memory_space<vmem>>, vector<1x48x48xbf16>
    %48 = vector.shape_cast %47 : vector<1x48x48xbf16> to vector<48x48xbf16>
    %cst_27 = arith.constant dense<0.000000e+00> : vector<48x128xf32>
    %49 = tpu.matmul %48, %46, %cst_27 {dimension_numbers = #tpu.dot_dimension_numbers<[1], [0], [0], [1], [0, 0, 1, 1], [], []>} : vector<48x48xbf16>, vector<48x128xbf16>, vector<48x128xf32> -> vector<48x128xf32>
    %50 = arith.addf %43, %49 : vector<48x128xf32>
    %c128 = arith.constant 128 : index
    %c0_28 = arith.constant 0 : index
    %51 = vector.load %arg5[%c128, %c0_28] : memref<192x128xbf16, #tpu.memory_space<vmem>>, vector<64x128xbf16>
    %cst_29 = arith.constant dense<0.000000e+00> : vector<48x128xf32>
    %52 = tpu.matmul %35, %51, %cst_29 {dimension_numbers = #tpu.dot_dimension_numbers<[1], [0], [0], [1], [0, 0, 1, 1], [], []>} : vector<48x64xbf16>, vector<64x128xbf16>, vector<48x128xf32> -> vector<48x128xf32>
    %53 = arith.truncf %52 : vector<48x128xf32> to vector<48x128xbf16>
    %c2_30 = arith.constant 2 : index
    %c0_31 = arith.constant 0 : index
    %c0_32 = arith.constant 0 : index
    %54 = vector.load %arg4[%c2_30, %c0_31, %c0_32] : memref<3x48x48xbf16, #tpu.memory_space<vmem>>, vector<1x48x48xbf16>
    %55 = vector.shape_cast %54 : vector<1x48x48xbf16> to vector<48x48xbf16>
    %cst_33 = arith.constant dense<0.000000e+00> : vector<48x128xf32>
    %56 = tpu.matmul %55, %53, %cst_33 {dimension_numbers = #tpu.dot_dimension_numbers<[1], [0], [0], [1], [0, 0, 1, 1], [], []>} : vector<48x48xbf16>, vector<48x128xbf16>, vector<48x128xf32> -> vector<48x128xf32>
    %57 = arith.addf %50, %56 : vector<48x128xf32>
    %c0_34 = arith.constant 0 : index
    %c0_35 = arith.constant 0 : index
    %58 = vector.load %arg6[%c0_34, %c0_35] : memref<1x128xf32, #tpu.memory_space<vmem>>, vector<1x128xf32>
    %59 = vector.broadcast %58 : vector<1x128xf32> to vector<48x128xf32>
    %60 = arith.addf %57, %59 : vector<48x128xf32>
    %cst_36 = arith.constant 0.000000e+00 : f32
    %61 = vector.broadcast %cst_36 : f32 to vector<48x128xf32>
    %62 = arith.maximumf %60, %61 : vector<48x128xf32>
    %63 = vector.shape_cast %62 : vector<48x128xf32> to vector<1x6x8x128xf32>
    %64 = arith.truncf %63 : vector<1x6x8x128xf32> to vector<1x6x8x128xbf16>
    %c0_37 = arith.constant 0 : index
    %c0_38 = arith.constant 0 : index
    %c0_39 = arith.constant 0 : index
    %c0_40 = arith.constant 0 : index
    %65 = vector.load %arg7[%c0_37, %c0_38, %c0_39, %c0_40] : memref<1x6x8x128xbf16, #tpu.memory_space<vmem>>, vector<1x6x8x128xbf16>
    tpu.vector_store %arg7[%c0_37, %c0_38, %c0_39, %c0_40], %64 {strides = array<i32>} : memref<1x6x8x128xbf16, #tpu.memory_space<vmem>>, vector<1x6x8x128xbf16>,
    return
  }
  func.func @transform_0(%arg0: i32) -> (i32, i32, i32, i32) {
    %c0_i32 = arith.constant 0 : i32
    %c0_i32_0 = arith.constant 0 : i32
    %c0_i32_1 = arith.constant 0 : i32
    %c0_i32_2 = arith.constant 0 : i32
    return %arg0, %c0_i32, %c0_i32_0, %c0_i32_1 : i32, i32, i32, i32
  }
  func.func @transform_1(%arg0: i32) -> (i32, i32) {
    %c0_i32 = arith.constant 0 : i32
    %c0_i32_0 = arith.constant 0 : i32
    %c0_i32_1 = arith.constant 0 : i32
    return %c0_i32, %c0_i32_0 : i32, i32
  }
  func.func @transform_2(%arg0: i32) -> (i32, i32) {
    %c0_i32 = arith.constant 0 : i32
    %c0_i32_0 = arith.constant 0 : i32
    %c0_i32_1 = arith.constant 0 : i32
    return %c0_i32, %c0_i32_0 : i32, i32
  }
  func.func @transform_3(%arg0: i32) -> (i32, i32, i32) {
    %c0_i32 = arith.constant 0 : i32
    %c0_i32_0 = arith.constant 0 : i32
    %c0_i32_1 = arith.constant 0 : i32
    %c0_i32_2 = arith.constant 0 : i32
    return %c0_i32, %c0_i32_0, %c0_i32_1 : i32, i32, i32
  }
  func.func @transform_4(%arg0: i32) -> (i32, i32) {
    %c0_i32 = arith.constant 0 : i32
    %c0_i32_0 = arith.constant 0 : i32
    %c0_i32_1 = arith.constant 0 : i32
    return %c0_i32, %c0_i32_0 : i32, i32
  }
  func.func @transform_5(%arg0: i32) -> (i32, i32) {
    %c0_i32 = arith.constant 0 : i32
    %c0_i32_0 = arith.constant 0 : i32
    %c0_i32_1 = arith.constant 0 : i32
    return %c0_i32, %c0_i32_0 : i32, i32
  }
  func.func @transform_6(%arg0: i32) -> (i32, i32, i32, i32) {
    %c0_i32 = arith.constant 0 : i32
    %c0_i32_0 = arith.constant 0 : i32
    %c0_i32_1 = arith.constant 0 : i32
    %c0_i32_2 = arith.constant 0 : i32
    return %arg0, %c0_i32, %c0_i32_0, %c0_i32_1 : i32, i32, i32, i32
  }
}

module attributes {stable_mosaic.version = 11 : i64} {
  func.func @_gdl_block_kernel(%arg0: i32, %arg1: memref<1x6x8x128xbf16, #tpu.memory_space<vmem>>, %arg2: memref<384x64xbf16, #tpu.memory_space<vmem>>, %arg3: memref<1x64xf32, #tpu.memory_space<vmem>>, %arg4: memref<3x32x32xbf16, #tpu.memory_space<vmem>>, %arg5: memref<192x16xbf16, #tpu.memory_space<vmem>>, %arg6: memref<1x16xf32, #tpu.memory_space<vmem>>, %arg7: memref<1x4x8x16xbf16, #tpu.memory_space<vmem>>) attributes {dimension_semantics = [#tpu.dimension_semantics<parallel>], iteration_bounds = array<i64: 2>, scalar_prefetch = 0 : i64, scratch_operands = 0 : i64, tpu.core_type = #tpu.core_type<tc>, window_params = [{transform_indices = @transform_0, window_bounds = array<i64: 1, 6, 8, 128>}, {pipeline_mode = #tpu.pipeline_mode<synchronous>, transform_indices = @transform_1, window_bounds = array<i64: 384, 64>}, {pipeline_mode = #tpu.pipeline_mode<synchronous>, transform_indices = @transform_2, window_bounds = array<i64: 1, 64>}, {pipeline_mode = #tpu.pipeline_mode<synchronous>, transform_indices = @transform_3, window_bounds = array<i64: 3, 32, 32>}, {pipeline_mode = #tpu.pipeline_mode<synchronous>, transform_indices = @transform_4, window_bounds = array<i64: 192, 16>}, {pipeline_mode = #tpu.pipeline_mode<synchronous>, transform_indices = @transform_5, window_bounds = array<i64: 1, 16>}, {transform_indices = @transform_6, window_bounds = array<i64: 1, 4, 8, 16>}]} {
    %cst = arith.constant 0.000000e+00 : f32
    %0 = vector.broadcast %cst : f32 to vector<32x64xf32>
    %c0 = arith.constant 0 : index
    %c0_0 = arith.constant 0 : index
    %c0_1 = arith.constant 0 : index
    %c0_2 = arith.constant 0 : index
    %1 = vector.load %arg1[%c0, %c0_0, %c0_1, %c0_2] : memref<1x6x8x128xbf16, #tpu.memory_space<vmem>>, vector<1x4x8x128xbf16>
    %2 = vector.shape_cast %1 : vector<1x4x8x128xbf16> to vector<4x8x128xbf16>
    %3 = vector.shape_cast %2 : vector<4x8x128xbf16> to vector<32x128xbf16>
    %c0_3 = arith.constant 0 : index
    %c0_4 = arith.constant 0 : index
    %4 = vector.load %arg2[%c0_3, %c0_4] : memref<384x64xbf16, #tpu.memory_space<vmem>>, vector<128x64xbf16>
    %cst_5 = arith.constant dense<0.000000e+00> : vector<32x64xf32>
    %5 = tpu.matmul %3, %4, %cst_5 {dimension_numbers = #tpu.dot_dimension_numbers<[1], [0], [0], [1], [0, 0, 1, 1], [], []>} : vector<32x128xbf16>, vector<128x64xbf16>, vector<32x64xf32> -> vector<32x64xf32>
    %6 = arith.addf %0, %5 : vector<32x64xf32>
    %c0_6 = arith.constant 0 : index
    %c1 = arith.constant 1 : index
    %c0_7 = arith.constant 0 : index
    %c0_8 = arith.constant 0 : index
    %7 = vector.load %arg1[%c0_6, %c1, %c0_7, %c0_8] : memref<1x6x8x128xbf16, #tpu.memory_space<vmem>>, vector<1x4x8x128xbf16>
    %8 = vector.shape_cast %7 : vector<1x4x8x128xbf16> to vector<4x8x128xbf16>
    %9 = vector.shape_cast %8 : vector<4x8x128xbf16> to vector<32x128xbf16>
    %c128 = arith.constant 128 : index
    %c0_9 = arith.constant 0 : index
    %10 = vector.load %arg2[%c128, %c0_9] : memref<384x64xbf16, #tpu.memory_space<vmem>>, vector<128x64xbf16>
    %cst_10 = arith.constant dense<0.000000e+00> : vector<32x64xf32>
    %11 = tpu.matmul %9, %10, %cst_10 {dimension_numbers = #tpu.dot_dimension_numbers<[1], [0], [0], [1], [0, 0, 1, 1], [], []>} : vector<32x128xbf16>, vector<128x64xbf16>, vector<32x64xf32> -> vector<32x64xf32>
    %12 = arith.addf %6, %11 : vector<32x64xf32>
    %c0_11 = arith.constant 0 : index
    %c2 = arith.constant 2 : index
    %c0_12 = arith.constant 0 : index
    %c0_13 = arith.constant 0 : index
    %13 = vector.load %arg1[%c0_11, %c2, %c0_12, %c0_13] : memref<1x6x8x128xbf16, #tpu.memory_space<vmem>>, vector<1x4x8x128xbf16>
    %14 = vector.shape_cast %13 : vector<1x4x8x128xbf16> to vector<4x8x128xbf16>
    %15 = vector.shape_cast %14 : vector<4x8x128xbf16> to vector<32x128xbf16>
    %c256 = arith.constant 256 : index
    %c0_14 = arith.constant 0 : index
    %16 = vector.load %arg2[%c256, %c0_14] : memref<384x64xbf16, #tpu.memory_space<vmem>>, vector<128x64xbf16>
    %cst_15 = arith.constant dense<0.000000e+00> : vector<32x64xf32>
    %17 = tpu.matmul %15, %16, %cst_15 {dimension_numbers = #tpu.dot_dimension_numbers<[1], [0], [0], [1], [0, 0, 1, 1], [], []>} : vector<32x128xbf16>, vector<128x64xbf16>, vector<32x64xf32> -> vector<32x64xf32>
    %18 = arith.addf %12, %17 : vector<32x64xf32>
    %c0_16 = arith.constant 0 : index
    %c0_17 = arith.constant 0 : index
    %19 = vector.load %arg3[%c0_16, %c0_17] : memref<1x64xf32, #tpu.memory_space<vmem>>, vector<1x64xf32>
    %20 = vector.broadcast %19 : vector<1x64xf32> to vector<32x64xf32>
    %21 = arith.addf %18, %20 : vector<32x64xf32>
    %cst_18 = arith.constant 0.000000e+00 : f32
    %22 = vector.broadcast %cst_18 : f32 to vector<32x64xf32>
    %23 = arith.maximumf %21, %22 : vector<32x64xf32>
    %24 = arith.truncf %23 : vector<32x64xf32> to vector<32x64xbf16>
    %cst_19 = arith.constant 0.000000e+00 : f32
    %25 = vector.broadcast %cst_19 : f32 to vector<32x16xf32>
    %c0_20 = arith.constant 0 : index
    %c0_21 = arith.constant 0 : index
    %26 = vector.load %arg5[%c0_20, %c0_21] : memref<192x16xbf16, #tpu.memory_space<vmem>>, vector<64x16xbf16>
    %cst_22 = arith.constant dense<0.000000e+00> : vector<32x16xf32>
    %27 = tpu.matmul %24, %26, %cst_22 {dimension_numbers = #tpu.dot_dimension_numbers<[1], [0], [0], [1], [0, 0, 1, 1], [], []>} : vector<32x64xbf16>, vector<64x16xbf16>, vector<32x16xf32> -> vector<32x16xf32>
    %28 = arith.truncf %27 : vector<32x16xf32> to vector<32x16xbf16>
    %c0_23 = arith.constant 0 : index
    %c0_24 = arith.constant 0 : index
    %c0_25 = arith.constant 0 : index
    %29 = vector.load %arg4[%c0_23, %c0_24, %c0_25] : memref<3x32x32xbf16, #tpu.memory_space<vmem>>, vector<1x32x32xbf16>
    %30 = vector.shape_cast %29 : vector<1x32x32xbf16> to vector<32x32xbf16>
    %cst_26 = arith.constant dense<0.000000e+00> : vector<32x16xf32>
    %31 = tpu.matmul %30, %28, %cst_26 {dimension_numbers = #tpu.dot_dimension_numbers<[1], [0], [0], [1], [0, 0, 1, 1], [], []>} : vector<32x32xbf16>, vector<32x16xbf16>, vector<32x16xf32> -> vector<32x16xf32>
    %32 = arith.addf %25, %31 : vector<32x16xf32>
    %c64 = arith.constant 64 : index
    %c0_27 = arith.constant 0 : index
    %33 = vector.load %arg5[%c64, %c0_27] : memref<192x16xbf16, #tpu.memory_space<vmem>>, vector<64x16xbf16>
    %cst_28 = arith.constant dense<0.000000e+00> : vector<32x16xf32>
    %34 = tpu.matmul %24, %33, %cst_28 {dimension_numbers = #tpu.dot_dimension_numbers<[1], [0], [0], [1], [0, 0, 1, 1], [], []>} : vector<32x64xbf16>, vector<64x16xbf16>, vector<32x16xf32> -> vector<32x16xf32>
    %35 = arith.truncf %34 : vector<32x16xf32> to vector<32x16xbf16>
    %c1_29 = arith.constant 1 : index
    %c0_30 = arith.constant 0 : index
    %c0_31 = arith.constant 0 : index
    %36 = vector.load %arg4[%c1_29, %c0_30, %c0_31] : memref<3x32x32xbf16, #tpu.memory_space<vmem>>, vector<1x32x32xbf16>
    %37 = vector.shape_cast %36 : vector<1x32x32xbf16> to vector<32x32xbf16>
    %cst_32 = arith.constant dense<0.000000e+00> : vector<32x16xf32>
    %38 = tpu.matmul %37, %35, %cst_32 {dimension_numbers = #tpu.dot_dimension_numbers<[1], [0], [0], [1], [0, 0, 1, 1], [], []>} : vector<32x32xbf16>, vector<32x16xbf16>, vector<32x16xf32> -> vector<32x16xf32>
    %39 = arith.addf %32, %38 : vector<32x16xf32>
    %c128_33 = arith.constant 128 : index
    %c0_34 = arith.constant 0 : index
    %40 = vector.load %arg5[%c128_33, %c0_34] : memref<192x16xbf16, #tpu.memory_space<vmem>>, vector<64x16xbf16>
    %cst_35 = arith.constant dense<0.000000e+00> : vector<32x16xf32>
    %41 = tpu.matmul %24, %40, %cst_35 {dimension_numbers = #tpu.dot_dimension_numbers<[1], [0], [0], [1], [0, 0, 1, 1], [], []>} : vector<32x64xbf16>, vector<64x16xbf16>, vector<32x16xf32> -> vector<32x16xf32>
    %42 = arith.truncf %41 : vector<32x16xf32> to vector<32x16xbf16>
    %c2_36 = arith.constant 2 : index
    %c0_37 = arith.constant 0 : index
    %c0_38 = arith.constant 0 : index
    %43 = vector.load %arg4[%c2_36, %c0_37, %c0_38] : memref<3x32x32xbf16, #tpu.memory_space<vmem>>, vector<1x32x32xbf16>
    %44 = vector.shape_cast %43 : vector<1x32x32xbf16> to vector<32x32xbf16>
    %cst_39 = arith.constant dense<0.000000e+00> : vector<32x16xf32>
    %45 = tpu.matmul %44, %42, %cst_39 {dimension_numbers = #tpu.dot_dimension_numbers<[1], [0], [0], [1], [0, 0, 1, 1], [], []>} : vector<32x32xbf16>, vector<32x16xbf16>, vector<32x16xf32> -> vector<32x16xf32>
    %46 = arith.addf %39, %45 : vector<32x16xf32>
    %c0_40 = arith.constant 0 : index
    %c0_41 = arith.constant 0 : index
    %47 = vector.load %arg6[%c0_40, %c0_41] : memref<1x16xf32, #tpu.memory_space<vmem>>, vector<1x16xf32>
    %48 = vector.broadcast %47 : vector<1x16xf32> to vector<32x16xf32>
    %49 = arith.addf %46, %48 : vector<32x16xf32>
    %cst_42 = arith.constant 0.000000e+00 : f32
    %50 = vector.broadcast %cst_42 : f32 to vector<32x16xf32>
    %51 = arith.maximumf %49, %50 : vector<32x16xf32>
    %52 = vector.shape_cast %51 : vector<32x16xf32> to vector<1x4x8x16xf32>
    %53 = arith.truncf %52 : vector<1x4x8x16xf32> to vector<1x4x8x16xbf16>
    %c0_43 = arith.constant 0 : index
    %c0_44 = arith.constant 0 : index
    %c0_45 = arith.constant 0 : index
    %c0_46 = arith.constant 0 : index
    %54 = vector.load %arg7[%c0_43, %c0_44, %c0_45, %c0_46] : memref<1x4x8x16xbf16, #tpu.memory_space<vmem>>, vector<1x4x8x16xbf16>
    tpu.vector_store %arg7[%c0_43, %c0_44, %c0_45, %c0_46], %53 {strides = array<i32>} : memref<1x4x8x16xbf16, #tpu.memory_space<vmem>>, vector<1x4x8x16xbf16>,
    return
  }
  func.func @transform_0(%arg0: i32) -> (i32, i32, i32, i32) {
    %c0_i32 = arith.constant 0 : i32
    %c0_i32_0 = arith.constant 0 : i32
    %c0_i32_1 = arith.constant 0 : i32
    %c0_i32_2 = arith.constant 0 : i32
    return %arg0, %c0_i32, %c0_i32_0, %c0_i32_1 : i32, i32, i32, i32
  }
  func.func @transform_1(%arg0: i32) -> (i32, i32) {
    %c0_i32 = arith.constant 0 : i32
    %c0_i32_0 = arith.constant 0 : i32
    %c0_i32_1 = arith.constant 0 : i32
    return %c0_i32, %c0_i32_0 : i32, i32
  }
  func.func @transform_2(%arg0: i32) -> (i32, i32) {
    %c0_i32 = arith.constant 0 : i32
    %c0_i32_0 = arith.constant 0 : i32
    %c0_i32_1 = arith.constant 0 : i32
    return %c0_i32, %c0_i32_0 : i32, i32
  }
  func.func @transform_3(%arg0: i32) -> (i32, i32, i32) {
    %c0_i32 = arith.constant 0 : i32
    %c0_i32_0 = arith.constant 0 : i32
    %c0_i32_1 = arith.constant 0 : i32
    %c0_i32_2 = arith.constant 0 : i32
    return %c0_i32, %c0_i32_0, %c0_i32_1 : i32, i32, i32
  }
  func.func @transform_4(%arg0: i32) -> (i32, i32) {
    %c0_i32 = arith.constant 0 : i32
    %c0_i32_0 = arith.constant 0 : i32
    %c0_i32_1 = arith.constant 0 : i32
    return %c0_i32, %c0_i32_0 : i32, i32
  }
  func.func @transform_5(%arg0: i32) -> (i32, i32) {
    %c0_i32 = arith.constant 0 : i32
    %c0_i32_0 = arith.constant 0 : i32
    %c0_i32_1 = arith.constant 0 : i32
    return %c0_i32, %c0_i32_0 : i32, i32
  }
  func.func @transform_6(%arg0: i32) -> (i32, i32, i32, i32) {
    %c0_i32 = arith.constant 0 : i32
    %c0_i32_0 = arith.constant 0 : i32
    %c0_i32_1 = arith.constant 0 : i32
    %c0_i32_2 = arith.constant 0 : i32
    return %arg0, %c0_i32, %c0_i32_0, %c0_i32_1 : i32, i32, i32, i32
  }
}

module attributes {stable_mosaic.version = 11 : i64} {
  func.func @_gdl_block_kernel(%arg0: i32, %arg1: memref<1x8x8x2xbf16, #tpu.memory_space<vmem>>, %arg2: memref<6x64xbf16, #tpu.memory_space<vmem>>, %arg3: memref<1x64xf32, #tpu.memory_space<vmem>>, %arg4: memref<3x48x48xbf16, #tpu.memory_space<vmem>>, %arg5: memref<192x128xbf16, #tpu.memory_space<vmem>>, %arg6: memref<1x128xf32, #tpu.memory_space<vmem>>, %arg7: memref<1x6x8x128xbf16, #tpu.memory_space<vmem>>) attributes {dimension_semantics = [#tpu.dimension_semantics<parallel>], iteration_bounds = array<i64: 2>, scalar_prefetch = 0 : i64, scratch_operands = 0 : i64, tpu.core_type = #tpu.core_type<tc>, window_params = [{transform_indices = @transform_0, window_bounds = array<i64: 1, 8, 8, 2>}, {pipeline_mode = #tpu.pipeline_mode<synchronous>, transform_indices = @transform_1, window_bounds = array<i64: 6, 64>}, {pipeline_mode = #tpu.pipeline_mode<synchronous>, transform_indices = @transform_2, window_bounds = array<i64: 1, 64>}, {pipeline_mode = #tpu.pipeline_mode<synchronous>, transform_indices = @transform_3, window_bounds = array<i64: 3, 48, 48>}, {pipeline_mode = #tpu.pipeline_mode<synchronous>, transform_indices = @transform_4, window_bounds = array<i64: 192, 128>}, {pipeline_mode = #tpu.pipeline_mode<synchronous>, transform_indices = @transform_5, window_bounds = array<i64: 1, 128>}, {transform_indices = @transform_6, window_bounds = array<i64: 1, 6, 8, 128>}]} {
    %cst = arith.constant 0.000000e+00 : f32
    %0 = vector.broadcast %cst : f32 to vector<48x64xf32>
    %c0 = arith.constant 0 : index
    %c0_0 = arith.constant 0 : index
    %1 = vector.load %arg2[%c0, %c0_0] : memref<6x64xbf16, #tpu.memory_space<vmem>>, vector<6x64xbf16>
    %2 = arith.extf %1 : vector<6x64xbf16> to vector<6x64xf32>
    %c0_1 = arith.constant 0 : index
    %c0_2 = arith.constant 0 : index
    %c0_3 = arith.constant 0 : index
    %c0_4 = arith.constant 0 : index
    %3 = vector.load %arg1[%c0_1, %c0_2, %c0_3, %c0_4] : memref<1x8x8x2xbf16, #tpu.memory_space<vmem>>, vector<1x6x8x2xbf16>
    %4 = vector.shape_cast %3 : vector<1x6x8x2xbf16> to vector<6x8x2xbf16>
    %5 = vector.shape_cast %4 : vector<6x8x2xbf16> to vector<48x2xbf16>
    %6 = arith.extf %5 : vector<48x2xbf16> to vector<48x2xf32>
    %7 = vector.extract_strided_slice %6 {offsets = [0, 0], sizes = [48, 1], strides = [1, 1]} : vector<48x2xf32> to vector<48x1xf32>
    %8 = vector.extract_strided_slice %2 {offsets = [0, 0], sizes = [1, 64], strides = [1, 1]} : vector<6x64xf32> to vector<1x64xf32>
    %9 = vector.broadcast %7 : vector<48x1xf32> to vector<48x64xf32>
    %10 = vector.broadcast %8 : vector<1x64xf32> to vector<48x64xf32>
    %11 = arith.mulf %9, %10 : vector<48x64xf32>
    %12 = arith.addf %0, %11 : vector<48x64xf32>
    %13 = vector.extract_strided_slice %6 {offsets = [0, 1], sizes = [48, 1], strides = [1, 1]} : vector<48x2xf32> to vector<48x1xf32>
    %14 = vector.extract_strided_slice %2 {offsets = [1, 0], sizes = [1, 64], strides = [1, 1]} : vector<6x64xf32> to vector<1x64xf32>
    %15 = vector.broadcast %13 : vector<48x1xf32> to vector<48x64xf32>
    %16 = vector.broadcast %14 : vector<1x64xf32> to vector<48x64xf32>
    %17 = arith.mulf %15, %16 : vector<48x64xf32>
    %18 = arith.addf %12, %17 : vector<48x64xf32>
    %c0_5 = arith.constant 0 : index
    %c1 = arith.constant 1 : index
    %c0_6 = arith.constant 0 : index
    %c0_7 = arith.constant 0 : index
    %19 = vector.load %arg1[%c0_5, %c1, %c0_6, %c0_7] : memref<1x8x8x2xbf16, #tpu.memory_space<vmem>>, vector<1x6x8x2xbf16>
    %20 = vector.shape_cast %19 : vector<1x6x8x2xbf16> to vector<6x8x2xbf16>
    %21 = vector.shape_cast %20 : vector<6x8x2xbf16> to vector<48x2xbf16>
    %22 = arith.extf %21 : vector<48x2xbf16> to vector<48x2xf32>
    %23 = vector.extract_strided_slice %22 {offsets = [0, 0], sizes = [48, 1], strides = [1, 1]} : vector<48x2xf32> to vector<48x1xf32>
    %24 = vector.extract_strided_slice %2 {offsets = [2, 0], sizes = [1, 64], strides = [1, 1]} : vector<6x64xf32> to vector<1x64xf32>
    %25 = vector.broadcast %23 : vector<48x1xf32> to vector<48x64xf32>
    %26 = vector.broadcast %24 : vector<1x64xf32> to vector<48x64xf32>
    %27 = arith.mulf %25, %26 : vector<48x64xf32>
    %28 = arith.addf %18, %27 : vector<48x64xf32>
    %29 = vector.extract_strided_slice %22 {offsets = [0, 1], sizes = [48, 1], strides = [1, 1]} : vector<48x2xf32> to vector<48x1xf32>
    %30 = vector.extract_strided_slice %2 {offsets = [3, 0], sizes = [1, 64], strides = [1, 1]} : vector<6x64xf32> to vector<1x64xf32>
    %31 = vector.broadcast %29 : vector<48x1xf32> to vector<48x64xf32>
    %32 = vector.broadcast %30 : vector<1x64xf32> to vector<48x64xf32>
    %33 = arith.mulf %31, %32 : vector<48x64xf32>
    %34 = arith.addf %28, %33 : vector<48x64xf32>
    %c0_8 = arith.constant 0 : index
    %c2 = arith.constant 2 : index
    %c0_9 = arith.constant 0 : index
    %c0_10 = arith.constant 0 : index
    %35 = vector.load %arg1[%c0_8, %c2, %c0_9, %c0_10] : memref<1x8x8x2xbf16, #tpu.memory_space<vmem>>, vector<1x6x8x2xbf16>
    %36 = vector.shape_cast %35 : vector<1x6x8x2xbf16> to vector<6x8x2xbf16>
    %37 = vector.shape_cast %36 : vector<6x8x2xbf16> to vector<48x2xbf16>
    %38 = arith.extf %37 : vector<48x2xbf16> to vector<48x2xf32>
    %39 = vector.extract_strided_slice %38 {offsets = [0, 0], sizes = [48, 1], strides = [1, 1]} : vector<48x2xf32> to vector<48x1xf32>
    %40 = vector.extract_strided_slice %2 {offsets = [4, 0], sizes = [1, 64], strides = [1, 1]} : vector<6x64xf32> to vector<1x64xf32>
    %41 = vector.broadcast %39 : vector<48x1xf32> to vector<48x64xf32>
    %42 = vector.broadcast %40 : vector<1x64xf32> to vector<48x64xf32>
    %43 = arith.mulf %41, %42 : vector<48x64xf32>
    %44 = arith.addf %34, %43 : vector<48x64xf32>
    %45 = vector.extract_strided_slice %38 {offsets = [0, 1], sizes = [48, 1], strides = [1, 1]} : vector<48x2xf32> to vector<48x1xf32>
    %46 = vector.extract_strided_slice %2 {offsets = [5, 0], sizes = [1, 64], strides = [1, 1]} : vector<6x64xf32> to vector<1x64xf32>
    %47 = vector.broadcast %45 : vector<48x1xf32> to vector<48x64xf32>
    %48 = vector.broadcast %46 : vector<1x64xf32> to vector<48x64xf32>
    %49 = arith.mulf %47, %48 : vector<48x64xf32>
    %50 = arith.addf %44, %49 : vector<48x64xf32>
    %c0_11 = arith.constant 0 : index
    %c0_12 = arith.constant 0 : index
    %51 = vector.load %arg3[%c0_11, %c0_12] : memref<1x64xf32, #tpu.memory_space<vmem>>, vector<1x64xf32>
    %52 = vector.broadcast %51 : vector<1x64xf32> to vector<48x64xf32>
    %53 = arith.addf %50, %52 : vector<48x64xf32>
    %cst_13 = arith.constant 0.000000e+00 : f32
    %54 = vector.broadcast %cst_13 : f32 to vector<48x64xf32>
    %55 = arith.maximumf %53, %54 : vector<48x64xf32>
    %56 = arith.truncf %55 : vector<48x64xf32> to vector<48x64xbf16>
    %cst_14 = arith.constant 0.000000e+00 : f32
    %57 = vector.broadcast %cst_14 : f32 to vector<48x128xf32>
    %c0_15 = arith.constant 0 : index
    %c0_16 = arith.constant 0 : index
    %58 = vector.load %arg5[%c0_15, %c0_16] : memref<192x128xbf16, #tpu.memory_space<vmem>>, vector<64x128xbf16>
    %cst_17 = arith.constant dense<0.000000e+00> : vector<48x128xf32>
    %59 = tpu.matmul %56, %58, %cst_17 {dimension_numbers = #tpu.dot_dimension_numbers<[1], [0], [0], [1], [0, 0, 1, 1], [], []>} : vector<48x64xbf16>, vector<64x128xbf16>, vector<48x128xf32> -> vector<48x128xf32>
    %60 = arith.truncf %59 : vector<48x128xf32> to vector<48x128xbf16>
    %c0_18 = arith.constant 0 : index
    %c0_19 = arith.constant 0 : index
    %c0_20 = arith.constant 0 : index
    %61 = vector.load %arg4[%c0_18, %c0_19, %c0_20] : memref<3x48x48xbf16, #tpu.memory_space<vmem>>, vector<1x48x48xbf16>
    %62 = vector.shape_cast %61 : vector<1x48x48xbf16> to vector<48x48xbf16>
    %cst_21 = arith.constant dense<0.000000e+00> : vector<48x128xf32>
    %63 = tpu.matmul %62, %60, %cst_21 {dimension_numbers = #tpu.dot_dimension_numbers<[1], [0], [0], [1], [0, 0, 1, 1], [], []>} : vector<48x48xbf16>, vector<48x128xbf16>, vector<48x128xf32> -> vector<48x128xf32>
    %64 = arith.addf %57, %63 : vector<48x128xf32>
    %c64 = arith.constant 64 : index
    %c0_22 = arith.constant 0 : index
    %65 = vector.load %arg5[%c64, %c0_22] : memref<192x128xbf16, #tpu.memory_space<vmem>>, vector<64x128xbf16>
    %cst_23 = arith.constant dense<0.000000e+00> : vector<48x128xf32>
    %66 = tpu.matmul %56, %65, %cst_23 {dimension_numbers = #tpu.dot_dimension_numbers<[1], [0], [0], [1], [0, 0, 1, 1], [], []>} : vector<48x64xbf16>, vector<64x128xbf16>, vector<48x128xf32> -> vector<48x128xf32>
    %67 = arith.truncf %66 : vector<48x128xf32> to vector<48x128xbf16>
    %c1_24 = arith.constant 1 : index
    %c0_25 = arith.constant 0 : index
    %c0_26 = arith.constant 0 : index
    %68 = vector.load %arg4[%c1_24, %c0_25, %c0_26] : memref<3x48x48xbf16, #tpu.memory_space<vmem>>, vector<1x48x48xbf16>
    %69 = vector.shape_cast %68 : vector<1x48x48xbf16> to vector<48x48xbf16>
    %cst_27 = arith.constant dense<0.000000e+00> : vector<48x128xf32>
    %70 = tpu.matmul %69, %67, %cst_27 {dimension_numbers = #tpu.dot_dimension_numbers<[1], [0], [0], [1], [0, 0, 1, 1], [], []>} : vector<48x48xbf16>, vector<48x128xbf16>, vector<48x128xf32> -> vector<48x128xf32>
    %71 = arith.addf %64, %70 : vector<48x128xf32>
    %c128 = arith.constant 128 : index
    %c0_28 = arith.constant 0 : index
    %72 = vector.load %arg5[%c128, %c0_28] : memref<192x128xbf16, #tpu.memory_space<vmem>>, vector<64x128xbf16>
    %cst_29 = arith.constant dense<0.000000e+00> : vector<48x128xf32>
    %73 = tpu.matmul %56, %72, %cst_29 {dimension_numbers = #tpu.dot_dimension_numbers<[1], [0], [0], [1], [0, 0, 1, 1], [], []>} : vector<48x64xbf16>, vector<64x128xbf16>, vector<48x128xf32> -> vector<48x128xf32>
    %74 = arith.truncf %73 : vector<48x128xf32> to vector<48x128xbf16>
    %c2_30 = arith.constant 2 : index
    %c0_31 = arith.constant 0 : index
    %c0_32 = arith.constant 0 : index
    %75 = vector.load %arg4[%c2_30, %c0_31, %c0_32] : memref<3x48x48xbf16, #tpu.memory_space<vmem>>, vector<1x48x48xbf16>
    %76 = vector.shape_cast %75 : vector<1x48x48xbf16> to vector<48x48xbf16>
    %cst_33 = arith.constant dense<0.000000e+00> : vector<48x128xf32>
    %77 = tpu.matmul %76, %74, %cst_33 {dimension_numbers = #tpu.dot_dimension_numbers<[1], [0], [0], [1], [0, 0, 1, 1], [], []>} : vector<48x48xbf16>, vector<48x128xbf16>, vector<48x128xf32> -> vector<48x128xf32>
    %78 = arith.addf %71, %77 : vector<48x128xf32>
    %c0_34 = arith.constant 0 : index
    %c0_35 = arith.constant 0 : index
    %79 = vector.load %arg6[%c0_34, %c0_35] : memref<1x128xf32, #tpu.memory_space<vmem>>, vector<1x128xf32>
    %80 = vector.broadcast %79 : vector<1x128xf32> to vector<48x128xf32>
    %81 = arith.addf %78, %80 : vector<48x128xf32>
    %cst_36 = arith.constant 0.000000e+00 : f32
    %82 = vector.broadcast %cst_36 : f32 to vector<48x128xf32>
    %83 = arith.maximumf %81, %82 : vector<48x128xf32>
    %84 = vector.shape_cast %83 : vector<48x128xf32> to vector<1x6x8x128xf32>
    %85 = arith.truncf %84 : vector<1x6x8x128xf32> to vector<1x6x8x128xbf16>
    %c0_37 = arith.constant 0 : index
    %c0_38 = arith.constant 0 : index
    %c0_39 = arith.constant 0 : index
    %c0_40 = arith.constant 0 : index
    %86 = vector.load %arg7[%c0_37, %c0_38, %c0_39, %c0_40] : memref<1x6x8x128xbf16, #tpu.memory_space<vmem>>, vector<1x6x8x128xbf16>
    tpu.vector_store %arg7[%c0_37, %c0_38, %c0_39, %c0_40], %85 {strides = array<i32>} : memref<1x6x8x128xbf16, #tpu.memory_space<vmem>>, vector<1x6x8x128xbf16>,
    return
  }
  func.func @transform_0(%arg0: i32) -> (i32, i32, i32, i32) {
    %c0_i32 = arith.constant 0 : i32
    %c0_i32_0 = arith.constant 0 : i32
    %c0_i32_1 = arith.constant 0 : i32
    %c0_i32_2 = arith.constant 0 : i32
    return %arg0, %c0_i32, %c0_i32_0, %c0_i32_1 : i32, i32, i32, i32
  }
  func.func @transform_1(%arg0: i32) -> (i32, i32) {
    %c0_i32 = arith.constant 0 : i32
    %c0_i32_0 = arith.constant 0 : i32
    %c0_i32_1 = arith.constant 0 : i32
    return %c0_i32, %c0_i32_0 : i32, i32
  }
  func.func @transform_2(%arg0: i32) -> (i32, i32) {
    %c0_i32 = arith.constant 0 : i32
    %c0_i32_0 = arith.constant 0 : i32
    %c0_i32_1 = arith.constant 0 : i32
    return %c0_i32, %c0_i32_0 : i32, i32
  }
  func.func @transform_3(%arg0: i32) -> (i32, i32, i32) {
    %c0_i32 = arith.constant 0 : i32
    %c0_i32_0 = arith.constant 0 : i32
    %c0_i32_1 = arith.constant 0 : i32
    %c0_i32_2 = arith.constant 0 : i32
    return %c0_i32, %c0_i32_0, %c0_i32_1 : i32, i32, i32
  }
  func.func @transform_4(%arg0: i32) -> (i32, i32) {
    %c0_i32 = arith.constant 0 : i32
    %c0_i32_0 = arith.constant 0 : i32
    %c0_i32_1 = arith.constant 0 : i32
    return %c0_i32, %c0_i32_0 : i32, i32
  }
  func.func @transform_5(%arg0: i32) -> (i32, i32) {
    %c0_i32 = arith.constant 0 : i32
    %c0_i32_0 = arith.constant 0 : i32
    %c0_i32_1 = arith.constant 0 : i32
    return %c0_i32, %c0_i32_0 : i32, i32
  }
  func.func @transform_6(%arg0: i32) -> (i32, i32, i32, i32) {
    %c0_i32 = arith.constant 0 : i32
    %c0_i32_0 = arith.constant 0 : i32
    %c0_i32_1 = arith.constant 0 : i32
    %c0_i32_2 = arith.constant 0 : i32
    return %arg0, %c0_i32, %c0_i32_0, %c0_i32_1 : i32, i32, i32, i32
  }
}

module attributes {stable_mosaic.version = 11 : i64} {
  func.func @_output_head_kernel(%arg0: i32, %arg1: memref<1x4x8x16xbf16, #tpu.memory_space<vmem>>, %arg2: memref<1x4x8x16xbf16, #tpu.memory_space<vmem>>, %arg3: memref<1x1x8x3xf32, #tpu.memory_space<vmem>>, %arg4: memref<3x16xf32, #tpu.memory_space<vmem>>, %arg5: memref<1x16xf32, #tpu.memory_space<vmem>>, %arg6: memref<4x16xf32, #tpu.memory_space<vmem>>, %arg7: memref<4x16xf32, #tpu.memory_space<vmem>>, %arg8: memref<1x16xf32, #tpu.memory_space<vmem>>, %arg9: memref<1x1xf32, #tpu.memory_space<vmem>>, %arg10: memref<1x8x1xf32, #tpu.memory_space<vmem>>) attributes {dimension_semantics = [#tpu.dimension_semantics<parallel>], iteration_bounds = array<i64: 2>, scalar_prefetch = 0 : i64, scratch_operands = 0 : i64, tpu.core_type = #tpu.core_type<tc>, window_params = [{transform_indices = @transform_0, window_bounds = array<i64: 1, 4, 8, 16>}, {transform_indices = @transform_1, window_bounds = array<i64: 1, 4, 8, 16>}, {transform_indices = @transform_2, window_bounds = array<i64: 1, 1, 8, 3>}, {pipeline_mode = #tpu.pipeline_mode<synchronous>, transform_indices = @transform_3, window_bounds = array<i64: 3, 16>}, {pipeline_mode = #tpu.pipeline_mode<synchronous>, transform_indices = @transform_4, window_bounds = array<i64: 1, 16>}, {pipeline_mode = #tpu.pipeline_mode<synchronous>, transform_indices = @transform_5, window_bounds = array<i64: 4, 16>}, {pipeline_mode = #tpu.pipeline_mode<synchronous>, transform_indices = @transform_6, window_bounds = array<i64: 4, 16>}, {pipeline_mode = #tpu.pipeline_mode<synchronous>, transform_indices = @transform_7, window_bounds = array<i64: 1, 16>}, {pipeline_mode = #tpu.pipeline_mode<synchronous>, transform_indices = @transform_8, window_bounds = array<i64: 1, 1>}, {transform_indices = @transform_9, window_bounds = array<i64: 1, 8, 1>}]} {
    %c0 = arith.constant 0 : index
    %c0_0 = arith.constant 0 : index
    %c0_1 = arith.constant 0 : index
    %c0_2 = arith.constant 0 : index
    %0 = vector.load %arg3[%c0, %c0_0, %c0_1, %c0_2] : memref<1x1x8x3xf32, #tpu.memory_space<vmem>>, vector<1x1x8x3xf32>
    %1 = vector.shape_cast %0 : vector<1x1x8x3xf32> to vector<8x3xf32>
    %c0_3 = arith.constant 0 : index
    %c0_4 = arith.constant 0 : index
    %2 = vector.load %arg4[%c0_3, %c0_4] : memref<3x16xf32, #tpu.memory_space<vmem>>, vector<3x16xf32>
    %cst = arith.constant 0.000000e+00 : f32
    %3 = vector.broadcast %cst : f32 to vector<8x16xf32>
    %c0_5 = arith.constant 0 : index
    %c0_6 = arith.constant 0 : index
    %4 = vector.load %arg5[%c0_5, %c0_6] : memref<1x16xf32, #tpu.memory_space<vmem>>, vector<1x16xf32>
    %5 = vector.broadcast %4 : vector<1x16xf32> to vector<8x16xf32>
    %6 = arith.addf %3, %5 : vector<8x16xf32>
    %7 = vector.extract_strided_slice %1 {offsets = [0, 0], sizes = [8, 1], strides = [1, 1]} : vector<8x3xf32> to vector<8x1xf32>
    %8 = vector.extract_strided_slice %2 {offsets = [0, 0], sizes = [1, 16], strides = [1, 1]} : vector<3x16xf32> to vector<1x16xf32>
    %9 = vector.broadcast %7 : vector<8x1xf32> to vector<8x16xf32>
    %10 = vector.broadcast %8 : vector<1x16xf32> to vector<8x16xf32>
    %11 = arith.mulf %9, %10 : vector<8x16xf32>
    %12 = arith.addf %6, %11 : vector<8x16xf32>
    %13 = vector.extract_strided_slice %1 {offsets = [0, 1], sizes = [8, 1], strides = [1, 1]} : vector<8x3xf32> to vector<8x1xf32>
    %14 = vector.extract_strided_slice %2 {offsets = [1, 0], sizes = [1, 16], strides = [1, 1]} : vector<3x16xf32> to vector<1x16xf32>
    %15 = vector.broadcast %13 : vector<8x1xf32> to vector<8x16xf32>
    %16 = vector.broadcast %14 : vector<1x16xf32> to vector<8x16xf32>
    %17 = arith.mulf %15, %16 : vector<8x16xf32>
    %18 = arith.addf %12, %17 : vector<8x16xf32>
    %19 = vector.extract_strided_slice %1 {offsets = [0, 2], sizes = [8, 1], strides = [1, 1]} : vector<8x3xf32> to vector<8x1xf32>
    %20 = vector.extract_strided_slice %2 {offsets = [2, 0], sizes = [1, 16], strides = [1, 1]} : vector<3x16xf32> to vector<1x16xf32>
    %21 = vector.broadcast %19 : vector<8x1xf32> to vector<8x16xf32>
    %22 = vector.broadcast %20 : vector<1x16xf32> to vector<8x16xf32>
    %23 = arith.mulf %21, %22 : vector<8x16xf32>
    %24 = arith.addf %18, %23 : vector<8x16xf32>
    %cst_7 = arith.constant 0.000000e+00 : f32
    %25 = vector.broadcast %cst_7 : f32 to vector<8x16xf32>
    %26 = arith.maximumf %24, %25 : vector<8x16xf32>
    %c0_8 = arith.constant 0 : index
    %c0_9 = arith.constant 0 : index
    %27 = vector.load %arg6[%c0_8, %c0_9] : memref<4x16xf32, #tpu.memory_space<vmem>>, vector<4x16xf32>
    %c0_10 = arith.constant 0 : index
    %c0_11 = arith.constant 0 : index
    %28 = vector.load %arg7[%c0_10, %c0_11] : memref<4x16xf32, #tpu.memory_space<vmem>>, vector<4x16xf32>
    %c0_12 = arith.constant 0 : index
    %c0_13 = arith.constant 0 : index
    %29 = vector.load %arg8[%c0_12, %c0_13] : memref<1x16xf32, #tpu.memory_space<vmem>>, vector<1x16xf32>
    %30 = vector.broadcast %29 : vector<1x16xf32> to vector<8x16xf32>
    %31 = arith.mulf %26, %30 : vector<8x16xf32>
    %c0_14 = arith.constant 0 : index
    %c0_15 = arith.constant 0 : index
    %c0_16 = arith.constant 0 : index
    %c0_17 = arith.constant 0 : index
    %32 = vector.load %arg1[%c0_14, %c0_15, %c0_16, %c0_17] : memref<1x4x8x16xbf16, #tpu.memory_space<vmem>>, vector<1x1x8x16xbf16>
    %33 = vector.shape_cast %32 : vector<1x1x8x16xbf16> to vector<8x16xbf16>
    %34 = arith.extf %33 : vector<8x16xbf16> to vector<8x16xf32>
    %35 = vector.extract_strided_slice %27 {offsets = [0, 0], sizes = [1, 16], strides = [1, 1]} : vector<4x16xf32> to vector<1x16xf32>
    %36 = vector.broadcast %35 : vector<1x16xf32> to vector<8x16xf32>
    %37 = arith.mulf %34, %36 : vector<8x16xf32>
    %38 = arith.addf %31, %37 : vector<8x16xf32>
    %c0_18 = arith.constant 0 : index
    %c0_19 = arith.constant 0 : index
    %c0_20 = arith.constant 0 : index
    %c0_21 = arith.constant 0 : index
    %39 = vector.load %arg2[%c0_18, %c0_19, %c0_20, %c0_21] : memref<1x4x8x16xbf16, #tpu.memory_space<vmem>>, vector<1x1x8x16xbf16>
    %40 = vector.shape_cast %39 : vector<1x1x8x16xbf16> to vector<8x16xbf16>
    %41 = arith.extf %40 : vector<8x16xbf16> to vector<8x16xf32>
    %42 = vector.extract_strided_slice %28 {offsets = [0, 0], sizes = [1, 16], strides = [1, 1]} : vector<4x16xf32> to vector<1x16xf32>
    %43 = vector.broadcast %42 : vector<1x16xf32> to vector<8x16xf32>
    %44 = arith.mulf %41, %43 : vector<8x16xf32>
    %45 = arith.addf %38, %44 : vector<8x16xf32>
    %c0_22 = arith.constant 0 : index
    %c1 = arith.constant 1 : index
    %c0_23 = arith.constant 0 : index
    %c0_24 = arith.constant 0 : index
    %46 = vector.load %arg1[%c0_22, %c1, %c0_23, %c0_24] : memref<1x4x8x16xbf16, #tpu.memory_space<vmem>>, vector<1x1x8x16xbf16>
    %47 = vector.shape_cast %46 : vector<1x1x8x16xbf16> to vector<8x16xbf16>
    %48 = arith.extf %47 : vector<8x16xbf16> to vector<8x16xf32>
    %49 = vector.extract_strided_slice %27 {offsets = [1, 0], sizes = [1, 16], strides = [1, 1]} : vector<4x16xf32> to vector<1x16xf32>
    %50 = vector.broadcast %49 : vector<1x16xf32> to vector<8x16xf32>
    %51 = arith.mulf %48, %50 : vector<8x16xf32>
    %52 = arith.addf %45, %51 : vector<8x16xf32>
    %c0_25 = arith.constant 0 : index
    %c1_26 = arith.constant 1 : index
    %c0_27 = arith.constant 0 : index
    %c0_28 = arith.constant 0 : index
    %53 = vector.load %arg2[%c0_25, %c1_26, %c0_27, %c0_28] : memref<1x4x8x16xbf16, #tpu.memory_space<vmem>>, vector<1x1x8x16xbf16>
    %54 = vector.shape_cast %53 : vector<1x1x8x16xbf16> to vector<8x16xbf16>
    %55 = arith.extf %54 : vector<8x16xbf16> to vector<8x16xf32>
    %56 = vector.extract_strided_slice %28 {offsets = [1, 0], sizes = [1, 16], strides = [1, 1]} : vector<4x16xf32> to vector<1x16xf32>
    %57 = vector.broadcast %56 : vector<1x16xf32> to vector<8x16xf32>
    %58 = arith.mulf %55, %57 : vector<8x16xf32>
    %59 = arith.addf %52, %58 : vector<8x16xf32>
    %c0_29 = arith.constant 0 : index
    %c2 = arith.constant 2 : index
    %c0_30 = arith.constant 0 : index
    %c0_31 = arith.constant 0 : index
    %60 = vector.load %arg1[%c0_29, %c2, %c0_30, %c0_31] : memref<1x4x8x16xbf16, #tpu.memory_space<vmem>>, vector<1x1x8x16xbf16>
    %61 = vector.shape_cast %60 : vector<1x1x8x16xbf16> to vector<8x16xbf16>
    %62 = arith.extf %61 : vector<8x16xbf16> to vector<8x16xf32>
    %63 = vector.extract_strided_slice %27 {offsets = [2, 0], sizes = [1, 16], strides = [1, 1]} : vector<4x16xf32> to vector<1x16xf32>
    %64 = vector.broadcast %63 : vector<1x16xf32> to vector<8x16xf32>
    %65 = arith.mulf %62, %64 : vector<8x16xf32>
    %66 = arith.addf %59, %65 : vector<8x16xf32>
    %c0_32 = arith.constant 0 : index
    %c2_33 = arith.constant 2 : index
    %c0_34 = arith.constant 0 : index
    %c0_35 = arith.constant 0 : index
    %67 = vector.load %arg2[%c0_32, %c2_33, %c0_34, %c0_35] : memref<1x4x8x16xbf16, #tpu.memory_space<vmem>>, vector<1x1x8x16xbf16>
    %68 = vector.shape_cast %67 : vector<1x1x8x16xbf16> to vector<8x16xbf16>
    %69 = arith.extf %68 : vector<8x16xbf16> to vector<8x16xf32>
    %70 = vector.extract_strided_slice %28 {offsets = [2, 0], sizes = [1, 16], strides = [1, 1]} : vector<4x16xf32> to vector<1x16xf32>
    %71 = vector.broadcast %70 : vector<1x16xf32> to vector<8x16xf32>
    %72 = arith.mulf %69, %71 : vector<8x16xf32>
    %73 = arith.addf %66, %72 : vector<8x16xf32>
    %c0_36 = arith.constant 0 : index
    %c3 = arith.constant 3 : index
    %c0_37 = arith.constant 0 : index
    %c0_38 = arith.constant 0 : index
    %74 = vector.load %arg1[%c0_36, %c3, %c0_37, %c0_38] : memref<1x4x8x16xbf16, #tpu.memory_space<vmem>>, vector<1x1x8x16xbf16>
    %75 = vector.shape_cast %74 : vector<1x1x8x16xbf16> to vector<8x16xbf16>
    %76 = arith.extf %75 : vector<8x16xbf16> to vector<8x16xf32>
    %77 = vector.extract_strided_slice %27 {offsets = [3, 0], sizes = [1, 16], strides = [1, 1]} : vector<4x16xf32> to vector<1x16xf32>
    %78 = vector.broadcast %77 : vector<1x16xf32> to vector<8x16xf32>
    %79 = arith.mulf %76, %78 : vector<8x16xf32>
    %80 = arith.addf %73, %79 : vector<8x16xf32>
    %c0_39 = arith.constant 0 : index
    %c3_40 = arith.constant 3 : index
    %c0_41 = arith.constant 0 : index
    %c0_42 = arith.constant 0 : index
    %81 = vector.load %arg2[%c0_39, %c3_40, %c0_41, %c0_42] : memref<1x4x8x16xbf16, #tpu.memory_space<vmem>>, vector<1x1x8x16xbf16>
    %82 = vector.shape_cast %81 : vector<1x1x8x16xbf16> to vector<8x16xbf16>
    %83 = arith.extf %82 : vector<8x16xbf16> to vector<8x16xf32>
    %84 = vector.extract_strided_slice %28 {offsets = [3, 0], sizes = [1, 16], strides = [1, 1]} : vector<4x16xf32> to vector<1x16xf32>
    %85 = vector.broadcast %84 : vector<1x16xf32> to vector<8x16xf32>
    %86 = arith.mulf %83, %85 : vector<8x16xf32>
    %87 = arith.addf %80, %86 : vector<8x16xf32>
    %cst_43 = arith.constant dense<0.000000e+00> : vector<8xf32>
    %88 = vector.multi_reduction <add>, %87, %cst_43 [1] : vector<8x16xf32> to vector<8xf32>
    %89 = vector.shape_cast %88 : vector<8xf32> to vector<8x1xf32>
    %c0_44 = arith.constant 0 : index
    %c0_45 = arith.constant 0 : index
    %90 = vector.load %arg9[%c0_44, %c0_45] : memref<1x1xf32, #tpu.memory_space<vmem>>, vector<1x1xf32>
    %91 = vector.broadcast %90 : vector<1x1xf32> to vector<8x1xf32>
    %92 = arith.addf %89, %91 : vector<8x1xf32>
    %93 = vector.shape_cast %92 : vector<8x1xf32> to vector<1x8x1xf32>
    %c0_46 = arith.constant 0 : index
    %c0_47 = arith.constant 0 : index
    %c0_48 = arith.constant 0 : index
    %94 = vector.load %arg10[%c0_46, %c0_47, %c0_48] : memref<1x8x1xf32, #tpu.memory_space<vmem>>, vector<1x8x1xf32>
    tpu.vector_store %arg10[%c0_46, %c0_47, %c0_48], %93 {strides = array<i32>} : memref<1x8x1xf32, #tpu.memory_space<vmem>>, vector<1x8x1xf32>,
    return
  }
  func.func @transform_0(%arg0: i32) -> (i32, i32, i32, i32) {
    %c0_i32 = arith.constant 0 : i32
    %c0_i32_0 = arith.constant 0 : i32
    %c0_i32_1 = arith.constant 0 : i32
    %c0_i32_2 = arith.constant 0 : i32
    return %arg0, %c0_i32, %c0_i32_0, %c0_i32_1 : i32, i32, i32, i32
  }
  func.func @transform_1(%arg0: i32) -> (i32, i32, i32, i32) {
    %c0_i32 = arith.constant 0 : i32
    %c0_i32_0 = arith.constant 0 : i32
    %c0_i32_1 = arith.constant 0 : i32
    %c0_i32_2 = arith.constant 0 : i32
    return %arg0, %c0_i32, %c0_i32_0, %c0_i32_1 : i32, i32, i32, i32
  }
  func.func @transform_2(%arg0: i32) -> (i32, i32, i32, i32) {
    %c0_i32 = arith.constant 0 : i32
    %c0_i32_0 = arith.constant 0 : i32
    %c0_i32_1 = arith.constant 0 : i32
    %c0_i32_2 = arith.constant 0 : i32
    return %arg0, %c0_i32, %c0_i32_0, %c0_i32_1 : i32, i32, i32, i32
  }
  func.func @transform_3(%arg0: i32) -> (i32, i32) {
    %c0_i32 = arith.constant 0 : i32
    %c0_i32_0 = arith.constant 0 : i32
    %c0_i32_1 = arith.constant 0 : i32
    return %c0_i32, %c0_i32_0 : i32, i32
  }
  func.func @transform_4(%arg0: i32) -> (i32, i32) {
    %c0_i32 = arith.constant 0 : i32
    %c0_i32_0 = arith.constant 0 : i32
    %c0_i32_1 = arith.constant 0 : i32
    return %c0_i32, %c0_i32_0 : i32, i32
  }
  func.func @transform_5(%arg0: i32) -> (i32, i32) {
    %c0_i32 = arith.constant 0 : i32
    %c0_i32_0 = arith.constant 0 : i32
    %c0_i32_1 = arith.constant 0 : i32
    return %c0_i32, %c0_i32_0 : i32, i32
  }
  func.func @transform_6(%arg0: i32) -> (i32, i32) {
    %c0_i32 = arith.constant 0 : i32
    %c0_i32_0 = arith.constant 0 : i32
    %c0_i32_1 = arith.constant 0 : i32
    return %c0_i32, %c0_i32_0 : i32, i32
  }
  func.func @transform_7(%arg0: i32) -> (i32, i32) {
    %c0_i32 = arith.constant 0 : i32
    %c0_i32_0 = arith.constant 0 : i32
    %c0_i32_1 = arith.constant 0 : i32
    return %c0_i32, %c0_i32_0 : i32, i32
  }
  func.func @transform_8(%arg0: i32) -> (i32, i32) {
    %c0_i32 = arith.constant 0 : i32
    %c0_i32_0 = arith.constant 0 : i32
    %c0_i32_1 = arith.constant 0 : i32
    return %c0_i32, %c0_i32_0 : i32, i32
  }
  func.func @transform_9(%arg0: i32) -> (i32, i32, i32) {
    %c0_i32 = arith.constant 0 : i32
    %c0_i32_0 = arith.constant 0 : i32
    %c0_i32_1 = arith.constant 0 : i32
    return %arg0, %c0_i32, %c0_i32_0 : i32, i32, i32
  }
}

</mosaic_0001>

<bundles_post_ra>
// kernel: gdlbe_forward.5
= control target key start
LH: loop header
LB: loop body
LE: loop exit
PB: predicated region body
PF: predicated region fallthrough
CT: control target
= control target key end

     0   :  { %s1506_s21 = smov 0   ;;  %s1703_s0 = inlined_call_operand.vmem [shape: bf16[2,8,8,1], index: 0, kind: input, shape index: {}]   ;;  %s1704_s1 = inlined_call_operand.vmem [shape: bf16[3,64], index: 1, kind: input, shape index: {}]   ;;  %s1705_s2 = inlined_call_operand.vmem [shape: f32[1,64], index: 2, kind: input, shape index: {}]   ;;  %s1706_s3 = inlined_call_operand.vmem [shape: bf16[3,48,48], index: 3, kind: input, shape index: {}]   ;;  %s1707_s4 = inlined_call_operand.vmem [shape: bf16[192,128], index: 4, kind: input, shape index: {}]   ;;  %s1708_s5 = inlined_call_operand.vmem [shape: f32[1,128], index: 5, kind: input, shape index: {}]   ;;  %s1709_s6 = inlined_call_operand.vmem [shape: bf16[2,6,8,128], index: 6, kind: output, shape index: {}]  }
   0x1 LB: > { %s1095_s22 = sadd.s32 4294967295, %s1466_s21   ;;  %p1099_p0 = scmp.ge.s32.totalorder %s1466_s21, 1  ;;  %s1466_s21 = sphi %s1506_s21, %s16_s21  }
   0x2   : > { %p212_p1 = scmp.lt.s32.totalorder %s1466_s21, 3 }
   0x4   : > { %p213_p2 = pnand %p1099_p0, %p212_p1 }
   0x5   : > { %p242_p3 = scmp.lt.s32.totalorder (!%p213_p2), %s1095_s22, 1  ;;  %v1468_v0 = vmov (!%p213_p2), 0   ;;  %v1439_v15 = vld [vmem:[%s1707_s4] sm:$0xff] (!%p213_p2)   ;;  %v1469_v17 = vmov (!%p213_p2), 0.0   ;;  %v1441_v22 = vld [vmem:[%s1707_s4 + $0x8] sm:$0xff] (!%p213_p2)   ;;  %v1443_v27 = vld [vmem:[%s1707_s4 + $0x10] sm:$0xff] (!%p213_p2)   ;;  %v297_v32 = vlaneseq (!%p213_p2) }
   0x6   : > { %216 = sbr.rel (%p213_p2) target bundleno = 900 (0x384), region = 44  ;;  %1403 = vset.pattern.permute.xlu1 (!%p213_p2), %v1468_v0  ;;  %1392 = vset.pattern.permute.xlu0 (!%p213_p2), %v1468_v0  ;;  %v1440_v16 = vld [vmem:[%s1707_s4 + $0x20] sm:$0xff] (!%p213_p2)   ;;  %v1442_v23 = vld [vmem:[%s1707_s4 + $0x28] sm:$0xff] (!%p213_p2)   ;;  %v1444_v28 = vld [vmem:[%s1707_s4 + $0x30] sm:$0xff] (!%p213_p2)   ;;  %vm1470_vm0 = vmmov (!%p213_p2), 0   ;;  %vm485_vm1 = vcmask (!%p213_p2), 523264  }
   0x7   : > { %1266 = vmatprep.subr.bf16.mxu0 (!%p213_p2), %v1469_v17  ;;  %1286 = vmatprep.subr.bf16.mxu1 (!%p213_p2), %v1469_v17  ;;  %v1445_v30 = vld [vmem:[%s1707_s4 + $0x18] sm:$0xff] (!%p213_p2)   ;;  %v298_v33 = vshrl.u32 (!%p213_p2), %v297_v32, 7  ;;  %v253_v34 = vld [vmem:[%s1704_s1] sm:$0x3] (!%p213_p2)  ;;  %vm675_vm2 = vcmask (!%p213_p2), 392192  }
   0x8   : > { %1267 = vmatpush3.bf16.msra.mxu0 (!%p213_p2), %v1439_v15  ;;  %1287 = vmatpush3.bf16.msra.mxu1 (!%p213_p2), %v1440_v16  ;;  %v1446_v31 = vld [vmem:[%s1707_s4 + $0x38] sm:$0xff] (!%p213_p2)   ;;  %v254_v35 = vunpack.c.l.bf16 (!%p213_p2), %v253_v34 }
   0x9   : > { %1268 = vmatprep.subr.bf16.mxu0 (!%p213_p2), %v1469_v17  ;;  %1288 = vmatprep.subr.bf16.mxu1 (!%p213_p2), %v1469_v17  ;;  %v417_v36 = vsub.s32 (!%p213_p2), 2, %v298_v33  ;;  %v299_v37 = vsub.s32 (!%p213_p2), 0, %v298_v33  ;;  %v358_v38 = vsub.s32 (!%p213_p2), 1, %v298_v33 }
   0xa   : > { %1274 = vmatprep.mubr.msk.bf16.mxu0 (!%p213_p2), %vm1470_vm0, %v1469_v17  ;;  %1294 = vmatprep.mubr.msk.bf16.mxu1 (!%p213_p2), %vm1470_vm0, %v1469_v17 }
   0xb   : > { %v1561_v41 = vrot.slane (!%p213_p2), %v254_v35, %v417_v36  ;;  %v300_v42 = vrot.slane (!%p213_p2), %v254_v35, %v299_v37  ;;  %v359_v47 = vrot.slane (!%p213_p2), %v254_v35, %v358_v38 }
   0xc   : > { %1269 = vmatpush3.bf16.msra.mxu0 (!%p213_p2), %v1441_v22  ;;  %1289 = vmatpush3.bf16.msra.mxu1 (!%p213_p2), %v1442_v23 }
   0xd   : > { %s1711_s22 = smov (!%p242_p3, %s1095_s22), 1  ;;  %1270 = vmatprep.subr.bf16.mxu0 %v1469_v17  ;;  %1290 = vmatprep.subr.bf16.mxu1 %v1469_v17 }
   0xe   : > { %s1170_s23 = sshll.u32 %s1711_s22, 5  ;;  %s1380_s7 = smul.u32 24, %s1711_s22 }
   0xf   : > { %s246_s26 = scalar_lea.vmem %s1703_s0, %s1170_s23 }
  0x10   : > { %v1222_v1 = vld [vmem:[%s246_s26 + $0x8] sm:$0xff]   ;;  %v1172_v2 = vld [vmem:[%s246_s26] sm:$0xff]   ;;  %v1223_v8 = vld [vmem:[%s246_s26 + $0x10] sm:$0xff]   ;;  %1271 = vmatpush3.bf16.msra.mxu0 %v1443_v27  ;;  %1291 = vmatpush3.bf16.msra.mxu1 %v1444_v28  ;;  %s251_s10 = scalar_lea.vmem %s1709_s6, %s1380_s7 }
  0x11   : > { %v1103_v3 = vld [vmem:[%s246_s26 + $0x4] ss:$20 sps:$4 sm:$0xff]   ;;  %v1193_v4 = vunpack.c.l.bf16 %v1222_v1  ;;  %v1194_v5 = vunpack.c.h.bf16 %v1222_v1  ;;  %v1173_v6 = vunpack.c.l.bf16 %v1172_v2  ;;  %v1174_v7 = vunpack.c.h.bf16 %v1172_v2  ;;  %1272 = vmatprep.subr.bf16.mxu0 %v1469_v17  ;;  %1292 = vmatprep.subr.bf16.mxu1 %v1469_v17  ;;  %v1115_v2 = vld [vmem:[%s1705_s2] ss:$0 sm:$0xff] }
  0x12   : > { %v320_v9 = vunpack.c.l.bf16 %v1103_v3  ;;  %v1197_v13 = vunpack.c.l.bf16 %v1223_v8  ;;  %v1198_v14 = vunpack.c.h.bf16 %v1223_v8  ;;  %v1224_v18 = vld [vmem:[%s246_s26 + $0x18] sm:$0xff]   ;;  %v325_v21 = vunpack.c.h.bf16 %v1103_v3 }
  0x13   : > { %v1404_v10 = vpack.i.bf16 %v1194_v5, %v1193_v4  ;;  %v1393_v11 = vpack.i.bf16 %v1174_v7, %v1173_v6  ;;  %v1201_v25 = vunpack.c.l.bf16 %v1224_v18  ;;  %v1202_v26 = vunpack.c.h.bf16 %v1224_v18 }
  0x14   : > { %v1398_v12 = vpack.i.bf16 %v1193_v4, %v320_v9  ;;  %v1419_v19 = vpack.i.bf16 %v1198_v14, %v1197_v13  ;;  %v1414_v20 = vpack.i.bf16 %v1197_v13, %v1194_v5  ;;  %v1429_v24 = vpack.i.bf16 %v325_v21, %v1198_v14  ;;  %1273 = vmatpush3.bf16.msra.mxu0 %v1445_v30 }
  0x15   : > { %1405 = vperm.xlu1 %1403, %v1404_v10   ;;  %1394 = vperm.xlu0 %1392, %v1393_v11   ;;  %v1434_v29 = vpack.i.bf16 %v1202_v26, %v1201_v25 }
  0x16   : > { %1293 = vmatpush3.bf16.msra.mxu1 %v1446_v31  ;;  %1306 = vmatprep.subr.bf16.mxu0 %v1469_v17 }
  0x17   : > { %1324 = vmatprep.subr.bf16.mxu1 %v1469_v17 }
  0x19   : > { %1410 = vperm.xlu1 %1403, %v1404_v10   ;;  %1399 = vperm.xlu0 %1392, %v1398_v12  }
  0x1d   : > { %1420 = vperm.xlu1 %1403, %v1419_v19   ;;  %1415 = vperm.xlu0 %1392, %v1414_v20  }
  0x21   : > { %1430 = vperm.xlu1 %1403, %v1429_v24   ;;  %1425 = vperm.xlu0 %1392, %v1419_v19  }
  0x25   : > { %1435 = vperm.xlu0 %1392, %v1434_v29  }
  0x94   : > { %v1406_v39 = vpop.permute.xlu1 %1405  ;;  %v1395_v40 = vpop.permute.xlu0 %1394 }
  0x95   : > { %v1408_v43 = vunpack.i.h.bf16 %v1406_v39  ;;  %v1407_v44 = vunpack.i.l.bf16 %v1406_v39  ;;  %v1397_v45 = vunpack.i.h.bf16 %v1395_v40  ;;  %v1396_v46 = vunpack.i.l.bf16 %v1395_v40 }
  0x97   : > { %v420_v52 = vmul.f32 %v1408_v43, %v1561_v41  ;;  %v419_v53 = vmul.f32 %v1407_v44, %v1561_v41  ;;  %v302_v54 = vmul.f32 %v1397_v45, %v300_v42  ;;  %v301_v55 = vmul.f32 %v1396_v46, %v300_v42 }
  0x98   : > { %v1411_v48 = vpop.permute.xlu1 %1410  ;;  %v1400_v49 = vpop.permute.xlu0 %1399 }
  0x99   : > { %v1402_v50 = vunpack.i.h.bf16 %v1400_v49  ;;  %v1401_v51 = vunpack.i.l.bf16 %v1400_v49  ;;  %v1413_v56 = vunpack.i.h.bf16 %v1411_v48  ;;  %v1412_v57 = vunpack.i.l.bf16 %v1411_v48 }
  0x9b   : > { %v361_v58 = vmul.f32 %v1402_v50, %v359_v47  ;;  %v360_v59 = vmul.f32 %v1401_v51, %v359_v47  ;;  %v304_v5 = vmul.f32 %v1413_v56, %v300_v42  ;;  %v303_v6 = vmul.f32 %v1412_v57, %v300_v42 }
  0x9c   : > { %v1421_v60 = vpop.permute.xlu1 %1420  ;;  %v1416_v61 = vpop.permute.xlu0 %1415 }
  0x9d   : > { %v366_v62 = vadd.f32 %v360_v59, %v301_v55  ;;  %v367_v63 = vadd.f32 %v361_v58, %v302_v54  ;;  %v1423_v0 = vunpack.i.h.bf16 %v1421_v60  ;;  %v1422_v1 = vunpack.i.l.bf16 %v1421_v60 }
  0x9e   : > { %v1418_v3 = vunpack.i.h.bf16 %v1416_v61  ;;  %v1417_v4 = vunpack.i.l.bf16 %v1416_v61 }
  0x9f   : > { %v425_v7 = vadd.f32 %v419_v53, %v366_v62  ;;  %v426_v8 = vadd.f32 %v420_v52, %v367_v63  ;;  %v422_v9 = vmul.f32 %v1423_v0, %v1561_v41  ;;  %v421_v10 = vmul.f32 %v1422_v1, %v1561_v41 }
  0xa0   : > { %v363_v11 = vmul.f32 %v1418_v3, %v359_v47  ;;  %v362_v12 = vmul.f32 %v1417_v4, %v359_v47  ;;  %v1431_v13 = vpop.permute.xlu1 %1430  ;;  %v1426_v14 = vpop.permute.xlu0 %1425 }
  0xa1   : > { %v438_v15 = vadd.f32 %v1115_v2, %v425_v7  ;;  %v439_v16 = vadd.f32 %v1115_v2, %v426_v8  ;;  %v1433_v18 = vunpack.i.h.bf16 %v1431_v13  ;;  %v1432_v19 = vunpack.i.l.bf16 %v1431_v13 }
  0xa2   : > { %v369_v20 = vadd.f32 %v363_v11, %v304_v5  ;;  %v368_v21 = vadd.f32 %v362_v12, %v303_v6  ;;  %v1428_v22 = vunpack.i.h.bf16 %v1426_v14  ;;  %v1427_v23 = vunpack.i.l.bf16 %v1426_v14 }
  0xa3   : > { %v365_v24 = vmul.f32 %v1433_v18, %v359_v47  ;;  %v364_v25 = vmul.f32 %v1432_v19, %v359_v47  ;;  %v444_v26 = vmax.f32 %v438_v15, 0.0  ;;  %v445_v27 = vmax.f32 %v439_v16, 0.0  ;;  %v1447_v19 = vld [vmem:[%s1706_s3 + $0x18] sm:$0xff]  }
  0xa4   : > { %v428_v28 = vadd.f32 %v422_v9, %v369_v20  ;;  %v427_v29 = vadd.f32 %v421_v10, %v368_v21  ;;  %v306_v30 = vmul.f32 %v1428_v22, %v300_v42  ;;  %v305_v31 = vmul.f32 %v1427_v23, %v300_v42  ;;  %v1436_v32 = vpop.permute.xlu0 %1435  ;;  %v1448_v20 = vld [vmem:[%s1706_s3] sm:$0xff]   ;;  %v1452_v22 = vld [vmem:[%s1707_s4 + $0x48] sm:$0xff]  }
  0xa5   : > { %v1438_v33 = vunpack.i.h.bf16 %v1436_v32  ;;  %v1437_v34 = vunpack.i.l.bf16 %v1436_v32  ;;  %v1570_v35 = vpack.c.bf16 %v445_v27, %v444_v26  ;;  %v1449_v21 = vld [vmem:[%s1707_s4 + $0x40] sm:$0xff]   ;;  %v1456_v26 = vld [vmem:[%s1707_s4 + $0x58] sm:$0xff]   ;;  %v1453_v27 = vld [vmem:[%s1706_s3 + $0x28] sm:$0xff]  }
  0xa6   : > { %v441_v36 = vadd.f32 %v1115_v2, %v428_v28  ;;  %v440_v37 = vadd.f32 %v1115_v2, %v427_v29  ;;  %v371_v38 = vadd.f32 %v365_v24, %v306_v30  ;;  %v370_v39 = vadd.f32 %v364_v25, %v305_v31  ;;  %v1450_v23 = vld [vmem:[%s1706_s3 + $0x20] sm:$0xff]   ;;  %v1451_v24 = vld [vmem:[%s1706_s3 + $0x8] sm:$0xff]   ;;  %v1455_v25 = vld [vmem:[%s1707_s4 + $0x50] sm:$0xff]  }
  0xa7   : > { %v424_v40 = vmul.f32 %v1438_v33, %v1561_v41  ;;  %v423_v43 = vmul.f32 %v1437_v34, %v1561_v41  ;;  %1275 = vmatmul.mubr.msk.bf16.vlgmr.msra.gmra.mrb[0].mxu0 %vm485_vm1, %v1570_v35  ;;  %1295 = vmatmul.mubr.msk.bf16.vlgmr.msra.gmra.mrb[0].mxu1 %vm485_vm1, %v1570_v35  ;;  %v1454_v28 = vld [vmem:[%s1706_s3 + $0x10] sm:$0xff]  }
  0xa8   : > { %1278 = vmatprep.mubr.msk.bf16.mxu0 %vm1470_vm0, %v1469_v17  ;;  %1298 = vmatprep.mubr.msk.bf16.mxu1 %vm1470_vm0, %v1469_v17  ;;  %v446_v45 = vmax.f32 %v440_v37, 0.0  ;;  %v447_v46 = vmax.f32 %v441_v36, 0.0 }
  0xa9   : > { %v429_v42 = vadd.f32 %v423_v43, %v370_v39  ;;  %v430_v44 = vadd.f32 %v424_v40, %v371_v38 }
  0xaa   : > { %v1582_v49 = vpack.c.bf16 %v447_v46, %v446_v45 }
  0xab   : > { %v442_v47 = vadd.f32 %v1115_v2, %v429_v42  ;;  %v443_v48 = vadd.f32 %v1115_v2, %v430_v44 }
  0xad   : > { %v448_v41 = vmax.f32 %v442_v47, 0.0  ;;  %v449_v50 = vmax.f32 %v443_v48, 0.0 }
  0xaf   : > { %1279 = vmatmul.mubr.msk.bf16.gmra.mrb[4].mxu0 %vm485_vm1, %v1582_v49  ;;  %1299 = vmatmul.mubr.msk.bf16.gmra.mrb[4].mxu1 %vm485_vm1, %v1582_v49  ;;  %v1592_v51 = vpack.c.bf16 %v449_v50, %v448_v41 }
  0xb0   : > { %1282 = vmatprep.mubr.msk.bf16.mxu0 %vm1470_vm0, %v1469_v17  ;;  %1302 = vmatprep.mubr.msk.bf16.mxu1 %vm1470_vm0, %v1469_v17 }
  0xb7   : > { %1283 = vmatmul.mubr.msk.bf16.gmra.mrb[8].mxu0 %vm485_vm1, %v1592_v51  ;;  %1303 = vmatmul.mubr.msk.bf16.gmra.mrb[8].mxu1 %vm485_vm1, %v1592_v51 }
  0xb8   : > { %1312 = vmatprep.mubr.msk.bf16.mxu0 %vm1470_vm0, %v1469_v17  ;;  %1330 = vmatprep.mubr.msk.bf16.mxu1 %vm1470_vm0, %v1469_v17 }
 0x17a   : > { %v529_v52 = vpop.f32.mrb[0].mxu0  ;;  %v627_v53 = vpop.f32.mrb[0].mxu1 }
 0x17b   : > { %v1276_v54 = vpop.f32.mrb[1].mxu0  ;;  %v1296_v55 = vpop.f32.mrb[1].mxu1 }
 0x17c   : > { %v532_v56 = vpop.f32.mrb[2].mxu0  ;;  %v630_v57 = vpop.f32.mrb[2].mxu1 }
 0x17d   : > { %v552_v58 = vpack.c.bf16 %v532_v56, %v529_v52  ;;  %v650_v59 = vpack.c.bf16 %v630_v57, %v627_v53  ;;  %v1277_v60 = vpop.f32.mrb[3].mxu0  ;;  %v1297_v61 = vpop.f32.mrb[3].mxu1 }
 0x17f   : > { %1307 = vmatpush3.bf16.msra.mxu0 %v650_v59  ;;  %1325 = vmatpush3.bf16.msra.mxu1 %v552_v58 }
 0x180   : > { %1308 = vmatprep.subr.bf16.mxu0 %v1469_v17  ;;  %1326 = vmatprep.subr.bf16.mxu1 %v1469_v17 }
 0x182   : > { %v537_v62 = vpop.f32.mrb[4].mxu0  ;;  %v635_v63 = vpop.f32.mrb[4].mxu1 }
 0x183   : > { %v1280_v0 = vpop.f32.mrb[5].mxu0  ;;  %v1300_v1 = vpop.f32.mrb[5].mxu1 }
 0x184   : > { %v540_v2 = vpop.f32.mrb[6].mxu0  ;;  %v638_v3 = vpop.f32.mrb[6].mxu1 }
 0x185   : > { %v553_v4 = vpack.c.bf16 %v540_v2, %v537_v62  ;;  %v651_v5 = vpack.c.bf16 %v638_v3, %v635_v63  ;;  %v1281_v6 = vpop.f32.mrb[7].mxu0  ;;  %v1301_v7 = vpop.f32.mrb[7].mxu1 }
 0x187   : > { %1309 = vmatpush3.bf16.msra.mxu0 %v651_v5  ;;  %1327 = vmatpush3.bf16.msra.mxu1 %v553_v4 }
 0x188   : > { %1310 = vmatprep.subr.bf16.mxu0 %v1469_v17  ;;  %1328 = vmatprep.subr.bf16.mxu1 %v1469_v17 }
 0x18a   : > { %v545_v8 = vpop.f32.mrb[8].mxu0  ;;  %v643_v9 = vpop.f32.mrb[8].mxu1 }
 0x18b   : > { %v1284_v10 = vpop.f32.mrb[9].mxu0  ;;  %v1304_v11 = vpop.f32.mrb[9].mxu1 }
 0x18c   : > { %v548_v12 = vpop.f32.mrb[10].mxu0  ;;  %v646_v13 = vpop.f32.mrb[10].mxu1  ;;  %v1457_v10 = vld [vmem:[%s1706_s3 + $0x30] sm:$0xff]   ;;  %v1458_v11 = vld [vmem:[%s1706_s3 + $0x38] sm:$0xff]  }
 0x18d   : > { %v554_v14 = vpack.c.bf16 %v548_v12, %v545_v8  ;;  %v652_v15 = vpack.c.bf16 %v646_v13, %v643_v9  ;;  %v1285_v16 = vpop.f32.mrb[11].mxu0  ;;  %v1305_v18 = vpop.f32.mrb[11].mxu1  ;;  %v1459_v12 = vld [vmem:[%s1706_s3 + $0x40] sm:$0xff]  }
 0x18f   : > { %1311 = vmatpush3.bf16.msra.mxu0 %v652_v15  ;;  %1329 = vmatpush3.bf16.msra.mxu1 %v554_v14  ;;  %v1167_v14 = vld [vmem:[%s1708_s5] ss:$0 sm:$0xff] }
 0x190   : > { %1342 = vmatprep.subr.bf16.mxu0 %v1469_v17  ;;  %1362 = vmatprep.subr.bf16.mxu1 %v1469_v17 }
 0x192   : > { %1313 = vmatmul.mubr.msk.bf16.vlgmr.msra.gmra.mrb[12].mxu0 %vm675_vm2, %v1447_v19  ;;  %1331 = vmatmul.mubr.msk.bf16.vlgmr.msra.gmra.mrb[12].mxu1 %vm675_vm2, %v1448_v20 }
 0x193   : > { %1343 = vmatpush3.bf16.msra.mxu0 %v1449_v21  ;;  %1316 = vmatprep.mubr.msk.bf16.mxu0 %vm1470_vm0, %v1469_v17 }
 0x194   : > { %1334 = vmatprep.mubr.msk.bf16.mxu1 %vm1470_vm0, %v1469_v17  ;;  %1344 = vmatprep.subr.bf16.mxu0 %v1469_v17 }
 0x197   : > { %1345 = vmatpush3.bf16.msra.mxu0 %v1452_v22 }
 0x198   : > { %1346 = vmatprep.subr.bf16.mxu0 %v1469_v17 }
 0x19a   : > { %1317 = vmatmul.mubr.msk.bf16.gmra.mrb[16].mxu0 %vm675_vm2, %v1450_v23  ;;  %1335 = vmatmul.mubr.msk.bf16.gmra.mrb[16].mxu1 %vm675_vm2, %v1451_v24 }
 0x19b   : > { %1320 = vmatprep.mubr.msk.bf16.mxu0 %vm1470_vm0, %v1469_v17  ;;  %1338 = vmatprep.mubr.msk.bf16.mxu1 %vm1470_vm0, %v1469_v17 }
 0x19c   : > { %1347 = vmatpush3.bf16.msra.mxu0 %v1455_v25 }
 0x19d   : > { %1348 = vmatprep.subr.bf16.mxu0 %v1469_v17 }
 0x1a0   : > { %1349 = vmatpush3.bf16.msra.mxu0 %v1456_v26 }
 0x1a2   : > { %1321 = vmatmul.mubr.msk.bf16.gmra.mrb[20].mxu0 %vm675_vm2, %v1453_v27  ;;  %1339 = vmatmul.mubr.msk.bf16.gmra.mrb[20].mxu1 %vm675_vm2, %v1454_v28 }
 0x1a3   : > { %1350 = vmatprep.mubr.msk.bf16.mxu0 %vm1470_vm0, %v1469_v17  ;;  %1368 = vmatprep.mubr.msk.bf16.mxu1 %vm1470_vm0, %v1469_v17 }
 0x1aa   : > { %1351 = vmatmul.mubr.msk.bf16.vlgmr.msra.gmra.mrb[24].mxu0 %vm485_vm1, %v1570_v35 }
 0x1ab   : > { %1354 = vmatprep.mubr.msk.bf16.mxu0 %vm1470_vm0, %v1469_v17 }
 0x1b2   : > { %1355 = vmatmul.mubr.msk.bf16.gmra.mrb[28].mxu0 %vm485_vm1, %v1582_v49 }
 0x1b3   : > { %1358 = vmatprep.mubr.msk.bf16.mxu0 %vm1470_vm0, %v1469_v17 }
 0x1ba   : > { %1359 = vmatmul.mubr.msk.bf16.gmra.mrb[32].mxu0 %vm485_vm1, %v1592_v51 }
 0x265   : > { %v719_v29 = vpop.f32.mrb[12].mxu0  ;;  %v800_v30 = vpop.f32.mrb[12].mxu1 }
 0x266   : > { %v801_v31 = vadd.f32 %v800_v30, %v719_v29  ;;  %v1314_v32 = vpop.f32.mrb[13].mxu0  ;;  %v1332_v33 = vpop.f32.mrb[13].mxu1 }
 0x267   : > { %v722_v34 = vpop.f32.mrb[14].mxu0  ;;  %v803_v36 = vpop.f32.mrb[14].mxu1 }
 0x268   : > { %v804_v35 = vadd.f32 %v803_v36, %v722_v34  ;;  %v1315_v37 = vpop.f32.mrb[15].mxu0  ;;  %v1333_v38 = vpop.f32.mrb[15].mxu1 }
 0x26d   : > { %v727_v39 = vpop.f32.mrb[16].mxu0  ;;  %v808_v40 = vpop.f32.mrb[16].mxu1 }
 0x26e   : > { %v809_v43 = vadd.f32 %v808_v40, %v727_v39  ;;  %v1318_v42 = vpop.f32.mrb[17].mxu0  ;;  %v1336_v44 = vpop.f32.mrb[17].mxu1 }
 0x26f   : > { %v730_v45 = vpop.f32.mrb[18].mxu0  ;;  %v811_v46 = vpop.f32.mrb[18].mxu1 }
 0x270   : > { %v812_v47 = vadd.f32 %v811_v46, %v730_v45  ;;  %v1319_v48 = vpop.f32.mrb[19].mxu0  ;;  %v1337_v49 = vpop.f32.mrb[19].mxu1 }
 0x275   : > { %v735_v41 = vpop.f32.mrb[20].mxu0  ;;  %v816_v50 = vpop.f32.mrb[20].mxu1 }
 0x276   : > { %v1669_v51 = vadd.f32 %v816_v50, %v735_v41  ;;  %v1322_v52 = vpop.f32.mrb[21].mxu0  ;;  %v1340_v53 = vpop.f32.mrb[21].mxu1 }
 0x277   : > { %v738_v54 = vpop.f32.mrb[22].mxu0  ;;  %v819_v55 = vpop.f32.mrb[22].mxu1 }
 0x278   : > { %v1671_v56 = vadd.f32 %v819_v55, %v738_v54  ;;  %v1323_v57 = vpop.f32.mrb[23].mxu0  ;;  %v1341_v58 = vpop.f32.mrb[23].mxu1 }
 0x27d   : > { %v889_v59 = vpop.f32.mrb[24].mxu0 }
 0x27e   : > { %v1352_v60 = vpop.f32.mrb[25].mxu0 }
 0x27f   : > { %v892_v61 = vpop.f32.mrb[26].mxu0 }
 0x280   : > { %v912_v62 = vpack.c.bf16 %v892_v61, %v889_v59  ;;  %v1353_v63 = vpop.f32.mrb[27].mxu0 }
 0x282   : > { %1363 = vmatpush3.bf16.msra.mxu1 %v912_v62 }
 0x283   : > { %1364 = vmatprep.subr.bf16.mxu1 %v1469_v17 }
 0x285   : > { %v897_v0 = vpop.f32.mrb[28].mxu0 }
 0x286   : > { %v1356_v1 = vpop.f32.mrb[29].mxu0 }
 0x287   : > { %v900_v2 = vpop.f32.mrb[30].mxu0 }
 0x288   : > { %v913_v3 = vpack.c.bf16 %v900_v2, %v897_v0  ;;  %v1357_v4 = vpop.f32.mrb[31].mxu0 }
 0x28a   : > { %1365 = vmatpush3.bf16.msra.mxu1 %v913_v3 }
 0x28b   : > { %1366 = vmatprep.subr.bf16.mxu1 %v1469_v17 }
 0x28d   : > { %v905_v5 = vpop.f32.mrb[32].mxu0 }
 0x28e   : > { %v1360_v6 = vpop.f32.mrb[33].mxu0 }
 0x28f   : > { %v908_v7 = vpop.f32.mrb[34].mxu0 }
 0x290   : > { %v914_v8 = vpack.c.bf16 %v908_v7, %v905_v5  ;;  %v1361_v9 = vpop.f32.mrb[35].mxu0 }
 0x292   : > { %1367 = vmatpush3.bf16.msra.mxu1 %v914_v8 }
 0x295   : > { %1369 = vmatmul.mubr.msk.bf16.vlgmr.msra.gmra.mrb[24].mxu1 %vm675_vm2, %v1457_v10 }
 0x296   : > { %1372 = vmatprep.mubr.msk.bf16.mxu1 %vm1470_vm0, %v1469_v17 }
 0x29d   : > { %1373 = vmatmul.mubr.msk.bf16.gmra.mrb[28].mxu1 %vm675_vm2, %v1458_v11 }
 0x29e   : > { %1376 = vmatprep.mubr.msk.bf16.mxu1 %vm1470_vm0, %v1469_v17 }
 0x2a5   : > { %1377 = vmatmul.mubr.msk.bf16.gmra.mrb[32].mxu1 %vm675_vm2, %v1459_v12 }
 0x368   : > { %v980_v13 = vpop.f32.mrb[24].mxu1 }
 0x369   : > { %v1003_v15 = vadd.f32 %v980_v13, %v801_v31  ;;  %v1370_v16 = vpop.f32.mrb[25].mxu1 }
 0x36a   : > { %v983_v18 = vpop.f32.mrb[26].mxu1 }
 0x36b   : > { %v1016_v19 = vadd.f32 %v1167_v14, %v1003_v15  ;;  %v1004_v20 = vadd.f32 %v983_v18, %v804_v35  ;;  %v1371_v21 = vpop.f32.mrb[27].mxu1 }
 0x36d   : > { %v1017_v22 = vadd.f32 %v1167_v14, %v1004_v20  ;;  %v1022_v17 = vmax.f32 %v1016_v19, 0.0 }
 0x36f   : > { %v1023_v23 = vmax.f32 %v1017_v22, 0.0 }
 0x370   : > { %v988_v24 = vpop.f32.mrb[28].mxu1 }
 0x371   : > { %v1206_v25 = vpack.c.bf16 %v1023_v23, %v1022_v17  ;;  %v1005_v26 = vadd.f32 %v988_v24, %v809_v43  ;;  %v1374_v27 = vpop.f32.mrb[29].mxu1 }
 0x372   : > { %v991_v28 = vpop.f32.mrb[30].mxu1 }
 0x373   : > { %1207 = vst [vmem:[%s251_s10] sm:$0xff] %v1206_v25   ;;  %v1018_v29 = vadd.f32 %v1167_v14, %v1005_v26  ;;  %v1006_v30 = vadd.f32 %v991_v28, %v812_v47  ;;  %v1375_v31 = vpop.f32.mrb[31].mxu1 }
 0x375   : > { %v1019_v32 = vadd.f32 %v1167_v14, %v1006_v30  ;;  %v1024_v33 = vmax.f32 %v1018_v29, 0.0 }
 0x377   : > { %v1025_v34 = vmax.f32 %v1019_v32, 0.0 }
 0x378   : > { %v996_v36 = vpop.f32.mrb[32].mxu1 }
 0x379   : > { %v1211_v35 = vpack.c.bf16 %v1025_v34, %v1024_v33  ;;  %v1007_v37 = vadd.f32 %v996_v36, %v1669_v51  ;;  %v1378_v38 = vpop.f32.mrb[33].mxu1 }
 0x37a   : > { %v999_v39 = vpop.f32.mrb[34].mxu1 }
 0x37b   : > { %1225 = vst [vmem:[%s251_s10 + $0x8] sm:$0xff] %v1211_v35   ;;  %v1020_v40 = vadd.f32 %v1167_v14, %v1007_v37  ;;  %v1008_v42 = vadd.f32 %v999_v39, %v1671_v56  ;;  %v1379_v43 = vpop.f32.mrb[35].mxu1 }
 0x37d   : > { %v1021_v44 = vadd.f32 %v1167_v14, %v1008_v42  ;;  %v1026_v45 = vmax.f32 %v1020_v40, 0.0 }
 0x37f   : > { %v1027_v46 = vmax.f32 %v1021_v44, 0.0 }
 0x381   : > { %v1216_v48 = vpack.c.bf16 %v1027_v46, %v1026_v45 }
 0x383   : > { %1226 = vst [vmem:[%s251_s10 + $0x10] sm:$0xff] %v1216_v48  }
 0x384 PF: > { %s16_s21 = sadd.s32 1, %s1466_s21  }
 0x385   : > { %p13_p4 = scmp.ge.s32.totalorder %s16_s21, 4  }
 0x387   :  { %15 = sbr.rel (!%p13_p4) target bundleno = 1 (0x1), region = 78 }

// kernel: gdlbe_forward.7
= control target key start
LH: loop header
LB: loop body
LE: loop exit
PB: predicated region body
PF: predicated region fallthrough
CT: control target
= control target key end

     0   :  { %s1682_s21 = smov 0   ;;  %s1940_s0 = inlined_call_operand.vmem [shape: bf16[2,8,8,2], index: 0, kind: input, shape index: {}]   ;;  %s1941_s1 = inlined_call_operand.vmem [shape: bf16[6,64], index: 1, kind: input, shape index: {}]   ;;  %s1942_s2 = inlined_call_operand.vmem [shape: f32[1,64], index: 2, kind: input, shape index: {}]   ;;  %s1943_s3 = inlined_call_operand.vmem [shape: bf16[3,48,48], index: 3, kind: input, shape index: {}]   ;;  %s1944_s4 = inlined_call_operand.vmem [shape: bf16[192,128], index: 4, kind: input, shape index: {}]   ;;  %s1945_s5 = inlined_call_operand.vmem [shape: f32[1,128], index: 5, kind: input, shape index: {}]   ;;  %s1946_s6 = inlined_call_operand.vmem [shape: bf16[2,6,8,128], index: 6, kind: output, shape index: {}]  }
   0x1 LB: > { %s1215_s22 = sadd.s32 4294967295, %s1641_s21   ;;  %p1219_p0 = scmp.ge.s32.totalorder %s1641_s21, 1  ;;  %s1641_s21 = sphi %s1682_s21, %s16_s21  }
   0x2   : > { %p212_p1 = scmp.lt.s32.totalorder %s1641_s21, 3 }
   0x4   : > { %p213_p2 = pnand %p1219_p0, %p212_p1 }
   0x5   : > { %p242_p3 = scmp.lt.s32.totalorder (!%p213_p2), %s1215_s22, 1  ;;  %v1643_v0 = vmov (!%p213_p2), 0   ;;  %v1644_v11 = vmov (!%p213_p2), 1   ;;  %v1614_v18 = vld [vmem:[%s1944_s4] sm:$0xff] (!%p213_p2)   ;;  %v1645_v20 = vmov (!%p213_p2), 0.0   ;;  %v1616_v21 = vld [vmem:[%s1944_s4 + $0x8] sm:$0xff] (!%p213_p2)   ;;  %v297_v33 = vlaneseq (!%p213_p2) }
   0x6   : > { %216 = sbr.rel (%p213_p2) target bundleno = 922 (0x39a), region = 44  ;;  %1525 = vset.pattern.permute.xlu1 (!%p213_p2), %v1643_v0  ;;  %1513 = vset.pattern.permute.xlu0 (!%p213_p2), %v1643_v0  ;;  %v1615_v19 = vld [vmem:[%s1944_s4 + $0x20] sm:$0xff] (!%p213_p2)   ;;  %v1617_v22 = vld [vmem:[%s1944_s4 + $0x28] sm:$0xff] (!%p213_p2)   ;;  %v1618_v25 = vld [vmem:[%s1944_s4 + $0x10] sm:$0xff] (!%p213_p2)   ;;  %vm1646_vm0 = vmmov (!%p213_p2), 0   ;;  %vm605_vm1 = vcmask (!%p213_p2), 523264  }
   0x7   : > { %1386 = vmatprep.subr.bf16.mxu0 (!%p213_p2), %v1645_v20  ;;  %1406 = vmatprep.subr.bf16.mxu1 (!%p213_p2), %v1645_v20  ;;  %v1619_v26 = vld [vmem:[%s1944_s4 + $0x30] sm:$0xff] (!%p213_p2)   ;;  %v1620_v30 = vld [vmem:[%s1944_s4 + $0x18] sm:$0xff] (!%p213_p2)   ;;  %v298_v34 = vshrl.u32 (!%p213_p2), %v297_v33, 7  ;;  %v253_v35 = vld [vmem:[%s1941_s1] sm:$0x7] (!%p213_p2)  ;;  %vm795_vm2 = vcmask (!%p213_p2), 392192  }
   0x8   : > { %1387 = vmatpush3.bf16.msra.mxu0 (!%p213_p2), %v1614_v18  ;;  %1407 = vmatpush3.bf16.msra.mxu1 (!%p213_p2), %v1615_v19  ;;  %v1621_v31 = vld [vmem:[%s1944_s4 + $0x38] sm:$0xff] (!%p213_p2)   ;;  %v254_v38 = vunpack.c.l.bf16 (!%p213_p2), %v253_v35 }
   0x9   : > { %1388 = vmatprep.subr.bf16.mxu0 (!%p213_p2), %v1645_v20  ;;  %1408 = vmatprep.subr.bf16.mxu1 (!%p213_p2), %v1645_v20  ;;  %v299_v36 = vsub.s32 (!%p213_p2), 0, %v298_v34  ;;  %v339_v40 = vsub.s32 (!%p213_p2), 1, %v298_v34  ;;  %v398_v41 = vsub.s32 (!%p213_p2), 2, %v298_v34  ;;  %v438_v50 = vsub.s32 (!%p213_p2), 3, %v298_v34 }
   0xa   : > { %1394 = vmatprep.mubr.msk.bf16.mxu0 (!%p213_p2), %vm1646_vm0, %v1645_v20  ;;  %1414 = vmatprep.mubr.msk.bf16.mxu1 (!%p213_p2), %vm1646_vm0, %v1645_v20  ;;  %v497_v56 = vsub.s32 (!%p213_p2), 4, %v298_v34 }
   0xb   : > { %v1750_v42 = vrot.slane (!%p213_p2), %v254_v38, %v299_v36  ;;  %v1752_v46 = vrot.slane (!%p213_p2), %v254_v38, %v339_v40  ;;  %v1754_v47 = vrot.slane (!%p213_p2), %v254_v38, %v398_v41  ;;  %v1762_v61 = vrot.slane (!%p213_p2), %v254_v38, %v438_v50 }
   0xc   : > { %1389 = vmatpush3.bf16.msra.mxu0 (!%p213_p2), %v1616_v21  ;;  %1409 = vmatpush3.bf16.msra.mxu1 (!%p213_p2), %v1617_v22 }
   0xd   : > { %s1948_s22 = smov (!%p242_p3, %s1215_s22), 1  ;;  %1390 = vmatprep.subr.bf16.mxu0 %v1645_v20  ;;  %1410 = vmatprep.subr.bf16.mxu1 %v1645_v20 }
   0xe   : > { %s1290_s23 = sshll.u32 %s1948_s22, 5  ;;  %s1500_s7 = smul.u32 24, %s1948_s22 }
   0xf   : > { %s1698_s26 = scalar_lea.vmem %s1940_s0, %s1290_s23 }
  0x10   : > { %v1223_v1 = vld [vmem:[%s1698_s26 + $0x4] ss:$20 sps:$4 sm:$0xff]   ;;  %v1340_v2 = vld [vmem:[%s1698_s26 + $0x8] sm:$0xff]   ;;  %v1341_v12 = vld [vmem:[%s1698_s26 + $0x10] sm:$0xff]   ;;  %1391 = vmatpush3.bf16.msra.mxu0 %v1618_v25  ;;  %1411 = vmatpush3.bf16.msra.mxu1 %v1619_v26  ;;  %s251_s10 = scalar_lea.vmem %s1946_s6, %s1500_s7 }
  0x11   : > { %v1292_v3 = vld [vmem:[%s1698_s26] sm:$0xff]   ;;  %v1305_v4 = vunpack.c.l.bf16 %v1340_v2  ;;  %v360_v5 = vunpack.c.l.bf16 %v1223_v1  ;;  %v1306_v10 = vunpack.c.h.bf16 %v1340_v2  ;;  %v1309_v14 = vunpack.c.l.bf16 %v1341_v12  ;;  %v1344_v24 = vld [vmem:[%s1698_s26 + $0x18] sm:$0xff]   ;;  %1392 = vmatprep.subr.bf16.mxu0 %v1645_v20  ;;  %1412 = vmatprep.subr.bf16.mxu1 %v1645_v20 }
  0x12   : > { %v1293_v6 = vunpack.c.l.bf16 %v1292_v3  ;;  %v1294_v7 = vunpack.c.h.bf16 %v1292_v3  ;;  %v1318_v16 = vunpack.c.h.bf16 %v1341_v12  ;;  %v365_v23 = vunpack.c.h.bf16 %v1223_v1 }
  0x13   : > { %v1526_v8 = vpack.i.bf16 %v1305_v4, %v360_v5  ;;  %v1538_v13 = vpack.i.bf16 %v1306_v10, %v1305_v4  ;;  %v1560_v15 = vpack.i.bf16 %v1309_v14, %v1306_v10  ;;  %v1321_v28 = vunpack.c.l.bf16 %v1344_v24 }
  0x14   : > { %v1514_v9 = vpack.i.bf16 %v1294_v7, %v1293_v6  ;;  %v1570_v17 = vpack.i.bf16 %v1318_v16, %v1309_v14  ;;  %v1599_v27 = vpack.i.bf16 %v365_v23, %v1318_v16  ;;  %v1322_v29 = vunpack.c.h.bf16 %v1344_v24  ;;  %1393 = vmatpush3.bf16.msra.mxu0 %v1620_v30  ;;  %1413 = vmatpush3.bf16.msra.mxu1 %v1621_v31 }
  0x15   : > { %1527 = vperm.xlu1 %1525, %v1526_v8   ;;  %1426 = vmatprep.subr.bf16.mxu0 %v1645_v20  ;;  %v1764_v4 = vrot.slane %v254_v38, %v497_v56 }
  0x16   : > { %1515 = vperm.xlu0 %1513, %v1514_v9   ;;  %v1609_v32 = vpack.i.bf16 %v1322_v29, %v1321_v28  ;;  %1444 = vmatprep.subr.bf16.mxu1 %v1645_v20 }
  0x19   : > { %1531 = vset.pattern.permute.xlu1 %v1644_v11 }
  0x1a   : > { %1519 = vset.pattern.permute.xlu0 %v1644_v11  ;;  %1533 = vperm.xlu1 %1531, %v1526_v8  }
  0x1b   : > { %1521 = vperm.xlu0 %1519, %v1514_v9   ;;  %v537_v9 = vsub.s32 5, %v298_v34 }
  0x1d   : > { %v1770_v23 = vrot.slane %v254_v38, %v537_v9  ;;  %v1781_v38 = vld [vmem:[%s1942_s2] ss:$0 sm:$0xff] }
  0x1e   : > { %1537 = vset.pattern.permute.xlu1 %v1643_v0 }
  0x1f   : > { %1539 = vperm.xlu1 %1537, %v1538_v13   ;;  %1543 = vset.pattern.permute.xlu0 %v1643_v0 }
  0x20   : > { %1545 = vperm.xlu0 %1543, %v1538_v13  }
  0x23   : > { %1549 = vset.pattern.permute.xlu1 %v1644_v11 }
  0x24   : > { %1551 = vperm.xlu1 %1549, %v1538_v13   ;;  %1561 = vperm.xlu0 %1543, %v1560_v15  }
  0x28   : > { %1556 = vperm.xlu1 %1549, %v1538_v13   ;;  %1571 = vperm.xlu0 %1543, %v1570_v17  }
  0x2c   : > { %1566 = vperm.xlu1 %1549, %v1560_v15   ;;  %1581 = vset.pattern.permute.xlu0 %v1644_v11 }
  0x2d   : > { %1583 = vperm.xlu0 %1581, %v1570_v17  }
  0x30   : > { %1575 = vset.pattern.permute.xlu1 %v1643_v0 }
  0x31   : > { %1577 = vperm.xlu1 %1575, %v1570_v17   ;;  %1600 = vperm.xlu0 %1581, %v1599_v27  }
  0x35   : > { %1587 = vset.pattern.permute.xlu1 %v1644_v11  ;;  %1610 = vperm.xlu0 %1581, %v1609_v32  }
  0x36   : > { %1589 = vperm.xlu1 %1587, %v1570_v17  }
  0x3a   : > { %1593 = vset.pattern.permute.xlu1 %v1643_v0 }
  0x3b   : > { %1595 = vperm.xlu1 %1593, %v1599_v27  }
  0x3f   : > { %1605 = vperm.xlu1 %1593, %v1609_v32  }
  0x94   : > { %v1528_v37 = vpop.permute.xlu1 %1527 }
  0x95   : > { %v1516_v39 = vpop.permute.xlu0 %1515  ;;  %v1530_v48 = vunpack.i.h.bf16 %v1528_v37  ;;  %v1529_v49 = vunpack.i.l.bf16 %v1528_v37 }
  0x96   : > { %v1518_v43 = vunpack.i.h.bf16 %v1516_v39  ;;  %v1517_v44 = vunpack.i.l.bf16 %v1516_v39 }
  0x97   : > { %v401_v59 = vmul.f32 %v1530_v48, %v1754_v47  ;;  %v400_v60 = vmul.f32 %v1529_v49, %v1754_v47 }
  0x98   : > { %v302_v52 = vmul.f32 %v1518_v43, %v1750_v42  ;;  %v301_v53 = vmul.f32 %v1517_v44, %v1750_v42 }
  0x99   : > { %v1534_v45 = vpop.permute.xlu1 %1533 }
  0x9a   : > { %v1522_v51 = vpop.permute.xlu0 %1521  ;;  %v1536_v63 = vunpack.i.h.bf16 %v1534_v45  ;;  %v1535_v0 = vunpack.i.l.bf16 %v1534_v45 }
  0x9b   : > { %v1524_v54 = vunpack.i.h.bf16 %v1522_v51  ;;  %v1523_v55 = vunpack.i.l.bf16 %v1522_v51 }
  0x9c   : > { %v441_v10 = vmul.f32 %v1536_v63, %v1762_v61  ;;  %v440_v11 = vmul.f32 %v1535_v0, %v1762_v61 }
  0x9d   : > { %v342_v57 = vmul.f32 %v1524_v54, %v1752_v46  ;;  %v341_v58 = vmul.f32 %v1523_v55, %v1752_v46 }
  0x9e   : > { %v1540_v62 = vpop.permute.xlu1 %1539 }
  0x9f   : > { %v347_v1 = vadd.f32 %v341_v58, %v301_v53  ;;  %v348_v2 = vadd.f32 %v342_v57, %v302_v52  ;;  %v1546_v3 = vpop.permute.xlu0 %1545  ;;  %v1542_v7 = vunpack.i.h.bf16 %v1540_v62  ;;  %v1541_v8 = vunpack.i.l.bf16 %v1540_v62 }
  0xa0   : > { %v1548_v13 = vunpack.i.h.bf16 %v1546_v3  ;;  %v1547_v14 = vunpack.i.l.bf16 %v1546_v3 }
  0xa1   : > { %v406_v5 = vadd.f32 %v400_v60, %v347_v1  ;;  %v407_v6 = vadd.f32 %v401_v59, %v348_v2  ;;  %v500_v15 = vmul.f32 %v1542_v7, %v1764_v4  ;;  %v499_v18 = vmul.f32 %v1541_v8, %v1764_v4 }
  0xa2   : > { %v304_v25 = vmul.f32 %v1548_v13, %v1750_v42  ;;  %v303_v26 = vmul.f32 %v1547_v14, %v1750_v42 }
  0xa3   : > { %v1552_v12 = vpop.permute.xlu1 %1551  ;;  %v446_v16 = vadd.f32 %v440_v11, %v406_v5  ;;  %v447_v17 = vadd.f32 %v441_v10, %v407_v6  ;;  %v1562_v19 = vpop.permute.xlu0 %1561 }
  0xa4   : > { %v1554_v21 = vunpack.i.h.bf16 %v1552_v12  ;;  %v1553_v22 = vunpack.i.l.bf16 %v1552_v12  ;;  %v1564_v31 = vunpack.i.h.bf16 %v1562_v19  ;;  %v1563_v32 = vunpack.i.l.bf16 %v1562_v19 }
  0xa5   : > { %v505_v29 = vadd.f32 %v499_v18, %v446_v16  ;;  %v506_v30 = vadd.f32 %v500_v15, %v447_v17 }
  0xa6   : > { %v344_v34 = vmul.f32 %v1554_v21, %v1752_v46  ;;  %v343_v35 = vmul.f32 %v1553_v22, %v1752_v46  ;;  %v403_v45 = vmul.f32 %v1564_v31, %v1754_v47  ;;  %v402_v48 = vmul.f32 %v1563_v32, %v1754_v47 }
  0xa7   : > { %v1557_v24 = vpop.permute.xlu1 %1556  ;;  %v1572_v33 = vpop.permute.xlu0 %1571 }
  0xa8   : > { %v1559_v27 = vunpack.i.h.bf16 %v1557_v24  ;;  %v1558_v28 = vunpack.i.l.bf16 %v1557_v24  ;;  %v349_v49 = vadd.f32 %v343_v35, %v303_v26  ;;  %v350_v50 = vadd.f32 %v344_v34, %v304_v25 }
  0xa9   : > { %v1574_v59 = vunpack.i.h.bf16 %v1572_v33  ;;  %v1573_v63 = vunpack.i.l.bf16 %v1572_v33 }
  0xaa   : > { %v540_v36 = vmul.f32 %v1559_v27, %v1770_v23  ;;  %v539_v37 = vmul.f32 %v1558_v28, %v1770_v23  ;;  %v408_v60 = vadd.f32 %v402_v48, %v349_v49  ;;  %v409_v62 = vadd.f32 %v403_v45, %v350_v50 }
  0xab   : > { %v1567_v39 = vpop.permute.xlu1 %1566  ;;  %v502_v10 = vmul.f32 %v1574_v59, %v1764_v4  ;;  %v501_v11 = vmul.f32 %v1573_v63, %v1764_v4 }
  0xac   : > { %v545_v40 = vadd.f32 %v539_v37, %v505_v29  ;;  %v546_v41 = vadd.f32 %v540_v36, %v506_v30  ;;  %v1569_v43 = vunpack.i.h.bf16 %v1567_v39  ;;  %v1568_v44 = vunpack.i.l.bf16 %v1567_v39  ;;  %v1584_v53 = vpop.permute.xlu0 %1583 }
  0xad   : > { %v1586_v6 = vunpack.i.h.bf16 %v1584_v53  ;;  %v1585_v7 = vunpack.i.l.bf16 %v1584_v53 }
  0xae   : > { %v558_v51 = vadd.f32 %v1781_v38, %v545_v40  ;;  %v559_v52 = vadd.f32 %v1781_v38, %v546_v41  ;;  %v443_v56 = vmul.f32 %v1569_v43, %v1762_v61  ;;  %v442_v57 = vmul.f32 %v1568_v44, %v1762_v61 }
  0xaf   : > { %v346_v24 = vmul.f32 %v1586_v6, %v1752_v46  ;;  %v345_v25 = vmul.f32 %v1585_v7, %v1752_v46 }
  0xb0   : > { %v564_v54 = vmax.f32 %v558_v51, 0.0  ;;  %v565_v55 = vmax.f32 %v559_v52, 0.0  ;;  %v1578_v58 = vpop.permute.xlu1 %1577  ;;  %v448_v1 = vadd.f32 %v442_v57, %v408_v60  ;;  %v449_v2 = vadd.f32 %v443_v56, %v409_v62  ;;  %v1601_v8 = vpop.permute.xlu0 %1600 }
  0xb1   : > { %v1580_v3 = vunpack.i.h.bf16 %v1578_v58  ;;  %v1579_v5 = vunpack.i.l.bf16 %v1578_v58  ;;  %v1603_v14 = vunpack.i.h.bf16 %v1601_v8  ;;  %v1602_v15 = vunpack.i.l.bf16 %v1601_v8 }
  0xb2   : > { %v1789_v0 = vpack.c.bf16 %v565_v55, %v564_v54  ;;  %v507_v16 = vadd.f32 %v501_v11, %v448_v1  ;;  %v508_v17 = vadd.f32 %v502_v10, %v449_v2 }
  0xb3   : > { %v306_v21 = vmul.f32 %v1580_v3, %v1750_v42  ;;  %v305_v22 = vmul.f32 %v1579_v5, %v1750_v42  ;;  %v445_v32 = vmul.f32 %v1603_v14, %v1762_v61  ;;  %v444_v33 = vmul.f32 %v1602_v15, %v1762_v61 }
  0xb4   : > { %1395 = vmatmul.mubr.msk.bf16.vlgmr.msra.gmra.mrb[0].mxu0 %vm605_vm1, %v1789_v0  ;;  %1415 = vmatmul.mubr.msk.bf16.vlgmr.msra.gmra.mrb[0].mxu1 %vm605_vm1, %v1789_v0  ;;  %v1611_v29 = vpop.permute.xlu0 %1610 }
  0xb5   : > { %v1590_v9 = vpop.permute.xlu1 %1589  ;;  %1398 = vmatprep.mubr.msk.bf16.mxu0 %vm1646_vm0, %v1645_v20  ;;  %1418 = vmatprep.mubr.msk.bf16.mxu1 %vm1646_vm0, %v1645_v20  ;;  %v352_v36 = vadd.f32 %v346_v24, %v306_v21  ;;  %v351_v42 = vadd.f32 %v345_v25, %v305_v22  ;;  %v1613_v41 = vunpack.i.h.bf16 %v1611_v29  ;;  %v1612_v43 = vunpack.i.l.bf16 %v1611_v29 }
  0xb6   : > { %v1592_v12 = vunpack.i.h.bf16 %v1590_v9  ;;  %v1591_v13 = vunpack.i.l.bf16 %v1590_v9 }
  0xb7   : > { %v544_v55 = vmul.f32 %v1613_v41, %v1770_v23  ;;  %v1629_v41 = vld [vmem:[%s1943_s3 + $0x10] sm:$0xff]  }
  0xb8   : > { %v542_v18 = vmul.f32 %v1592_v12, %v1770_v23  ;;  %v541_v19 = vmul.f32 %v1591_v13, %v1770_v23 }
  0xba   : > { %v547_v26 = vadd.f32 %v541_v19, %v507_v16  ;;  %v548_v27 = vadd.f32 %v542_v18, %v508_v17  ;;  %v1596_v28 = vpop.permute.xlu1 %1595 }
  0xbb   : > { %v1598_v30 = vunpack.i.h.bf16 %v1596_v28  ;;  %v1597_v31 = vunpack.i.l.bf16 %v1596_v28 }
  0xbc   : > { %v560_v34 = vadd.f32 %v1781_v38, %v547_v26  ;;  %v561_v35 = vadd.f32 %v1781_v38, %v548_v27 }
  0xbd   : > { %v405_v37 = vmul.f32 %v1598_v30, %v1754_v47  ;;  %v404_v46 = vmul.f32 %v1597_v31, %v1754_v47  ;;  %v543_v47 = vmul.f32 %v1612_v43, %v1770_v23 }
  0xbe   : > { %v566_v39 = vmax.f32 %v560_v34, 0.0  ;;  %v567_v40 = vmax.f32 %v561_v35, 0.0  ;;  %v1606_v44 = vpop.permute.xlu1 %1605  ;;  %v1623_v34 = vld [vmem:[%s1943_s3] sm:$0xff]  }
  0xbf   : > { %v410_v45 = vadd.f32 %v404_v46, %v351_v42  ;;  %v411_v48 = vadd.f32 %v405_v37, %v352_v36  ;;  %v1608_v49 = vunpack.i.h.bf16 %v1606_v44  ;;  %v1607_v50 = vunpack.i.l.bf16 %v1606_v44  ;;  %v1624_v35 = vld [vmem:[%s1944_s4 + $0x40] sm:$0xff]   ;;  %v1627_v36 = vld [vmem:[%s1944_s4 + $0x48] sm:$0xff]   ;;  %v1630_v46 = vld [vmem:[%s1944_s4 + $0x50] sm:$0xff]  }
  0xc0   : > { %v1813_v61 = vpack.c.bf16 %v567_v40, %v566_v39  ;;  %v1625_v42 = vld [vmem:[%s1943_s3 + $0x20] sm:$0xff]   ;;  %v1626_v37 = vld [vmem:[%s1943_s3 + $0x8] sm:$0xff]   ;;  %v1631_v39 = vld [vmem:[%s1944_s4 + $0x58] sm:$0xff]  }
  0xc1   : > { %v504_v51 = vmul.f32 %v1608_v49, %v1764_v4  ;;  %v450_v52 = vadd.f32 %v444_v33, %v410_v45  ;;  %v451_v53 = vadd.f32 %v445_v32, %v411_v48  ;;  %v503_v54 = vmul.f32 %v1607_v50, %v1764_v4  ;;  %v1622_v33 = vld [vmem:[%s1943_s3 + $0x18] sm:$0xff]   ;;  %v1628_v40 = vld [vmem:[%s1943_s3 + $0x28] sm:$0xff]  }
  0xc2   : > { %1399 = vmatmul.mubr.msk.bf16.gmra.mrb[4].mxu0 %vm605_vm1, %v1813_v61  ;;  %1419 = vmatmul.mubr.msk.bf16.gmra.mrb[4].mxu1 %vm605_vm1, %v1813_v61 }
  0xc3   : > { %v509_v56 = vadd.f32 %v503_v54, %v450_v52  ;;  %v510_v57 = vadd.f32 %v504_v51, %v451_v53  ;;  %1402 = vmatprep.mubr.msk.bf16.mxu0 %vm1646_vm0, %v1645_v20  ;;  %1422 = vmatprep.mubr.msk.bf16.mxu1 %vm1646_vm0, %v1645_v20 }
  0xc5   : > { %v549_v58 = vadd.f32 %v543_v47, %v509_v56  ;;  %v550_v4 = vadd.f32 %v544_v55, %v510_v57 }
  0xc7   : > { %v562_v59 = vadd.f32 %v1781_v38, %v549_v58  ;;  %v563_v60 = vadd.f32 %v1781_v38, %v550_v4 }
  0xc9   : > { %v568_v62 = vmax.f32 %v562_v59, 0.0  ;;  %v569_v63 = vmax.f32 %v563_v60, 0.0 }
  0xcb   : > { %v1829_v1 = vpack.c.bf16 %v569_v63, %v568_v62 }
  0xcd   : > { %1403 = vmatmul.mubr.msk.bf16.gmra.mrb[8].mxu0 %vm605_vm1, %v1829_v1  ;;  %1423 = vmatmul.mubr.msk.bf16.gmra.mrb[8].mxu1 %vm605_vm1, %v1829_v1 }
  0xce   : > { %1432 = vmatprep.mubr.msk.bf16.mxu0 %vm1646_vm0, %v1645_v20  ;;  %1450 = vmatprep.mubr.msk.bf16.mxu1 %vm1646_vm0, %v1645_v20 }
 0x187   : > { %v649_v23 = vpop.f32.mrb[0].mxu0  ;;  %v747_v2 = vpop.f32.mrb[0].mxu1 }
 0x188   : > { %v1396_v3 = vpop.f32.mrb[1].mxu0  ;;  %v1416_v38 = vpop.f32.mrb[1].mxu1 }
 0x189   : > { %v652_v5 = vpop.f32.mrb[2].mxu0  ;;  %v750_v6 = vpop.f32.mrb[2].mxu1 }
 0x18a   : > { %v672_v7 = vpack.c.bf16 %v652_v5, %v649_v23  ;;  %v770_v8 = vpack.c.bf16 %v750_v6, %v747_v2  ;;  %v1397_v9 = vpop.f32.mrb[3].mxu0  ;;  %v1417_v10 = vpop.f32.mrb[3].mxu1 }
 0x18c   : > { %1427 = vmatpush3.bf16.msra.mxu0 %v770_v8  ;;  %1445 = vmatpush3.bf16.msra.mxu1 %v672_v7 }
 0x18d   : > { %1428 = vmatprep.subr.bf16.mxu0 %v1645_v20  ;;  %1446 = vmatprep.subr.bf16.mxu1 %v1645_v20 }
 0x195   : > { %v657_v11 = vpop.f32.mrb[4].mxu0  ;;  %v755_v12 = vpop.f32.mrb[4].mxu1 }
 0x196   : > { %v1400_v13 = vpop.f32.mrb[5].mxu0  ;;  %v1420_v14 = vpop.f32.mrb[5].mxu1 }
 0x197   : > { %v660_v15 = vpop.f32.mrb[6].mxu0  ;;  %v758_v16 = vpop.f32.mrb[6].mxu1 }
 0x198   : > { %v673_v17 = vpack.c.bf16 %v660_v15, %v657_v11  ;;  %v771_v18 = vpack.c.bf16 %v758_v16, %v755_v12  ;;  %v1401_v19 = vpop.f32.mrb[7].mxu0  ;;  %v1421_v21 = vpop.f32.mrb[7].mxu1 }
 0x19a   : > { %1429 = vmatpush3.bf16.msra.mxu0 %v771_v18  ;;  %1447 = vmatpush3.bf16.msra.mxu1 %v673_v17 }
 0x19b   : > { %1430 = vmatprep.subr.bf16.mxu0 %v1645_v20  ;;  %1448 = vmatprep.subr.bf16.mxu1 %v1645_v20 }
 0x1a0   : > { %v665_v22 = vpop.f32.mrb[8].mxu0  ;;  %v763_v24 = vpop.f32.mrb[8].mxu1 }
 0x1a1   : > { %v1404_v25 = vpop.f32.mrb[9].mxu0  ;;  %v1424_v26 = vpop.f32.mrb[9].mxu1 }
 0x1a2   : > { %v668_v27 = vpop.f32.mrb[10].mxu0  ;;  %v766_v28 = vpop.f32.mrb[10].mxu1  ;;  %v1632_v25 = vld [vmem:[%s1943_s3 + $0x30] sm:$0xff]   ;;  %v1633_v26 = vld [vmem:[%s1943_s3 + $0x38] sm:$0xff]  }
 0x1a3   : > { %v674_v29 = vpack.c.bf16 %v668_v27, %v665_v22  ;;  %v772_v30 = vpack.c.bf16 %v766_v28, %v763_v24  ;;  %v1405_v31 = vpop.f32.mrb[11].mxu0  ;;  %v1425_v32 = vpop.f32.mrb[11].mxu1  ;;  %v1634_v27 = vld [vmem:[%s1943_s3 + $0x40] sm:$0xff]  }
 0x1a5   : > { %1431 = vmatpush3.bf16.msra.mxu0 %v772_v30  ;;  %1449 = vmatpush3.bf16.msra.mxu1 %v674_v29  ;;  %v1287_v29 = vld [vmem:[%s1945_s5] ss:$0 sm:$0xff] }
 0x1a6   : > { %1462 = vmatprep.subr.bf16.mxu0 %v1645_v20  ;;  %1482 = vmatprep.subr.bf16.mxu1 %v1645_v20 }
 0x1a8   : > { %1433 = vmatmul.mubr.msk.bf16.vlgmr.msra.gmra.mrb[12].mxu0 %vm795_vm2, %v1622_v33  ;;  %1451 = vmatmul.mubr.msk.bf16.vlgmr.msra.gmra.mrb[12].mxu1 %vm795_vm2, %v1623_v34 }
 0x1a9   : > { %1463 = vmatpush3.bf16.msra.mxu0 %v1624_v35  ;;  %1436 = vmatprep.mubr.msk.bf16.mxu0 %vm1646_vm0, %v1645_v20 }
 0x1aa   : > { %1454 = vmatprep.mubr.msk.bf16.mxu1 %vm1646_vm0, %v1645_v20  ;;  %1464 = vmatprep.subr.bf16.mxu0 %v1645_v20 }
 0x1ad   : > { %1465 = vmatpush3.bf16.msra.mxu0 %v1627_v36 }
 0x1ae   : > { %1466 = vmatprep.subr.bf16.mxu0 %v1645_v20 }
 0x1b0   : > { %1437 = vmatmul.mubr.msk.bf16.gmra.mrb[16].mxu0 %vm795_vm2, %v1625_v42  ;;  %1455 = vmatmul.mubr.msk.bf16.gmra.mrb[16].mxu1 %vm795_vm2, %v1626_v37 }
 0x1b1   : > { %1440 = vmatprep.mubr.msk.bf16.mxu0 %vm1646_vm0, %v1645_v20  ;;  %1458 = vmatprep.mubr.msk.bf16.mxu1 %vm1646_vm0, %v1645_v20 }
 0x1b2   : > { %1467 = vmatpush3.bf16.msra.mxu0 %v1630_v46 }
 0x1b3   : > { %1468 = vmatprep.subr.bf16.mxu0 %v1645_v20 }
 0x1b6   : > { %1469 = vmatpush3.bf16.msra.mxu0 %v1631_v39 }
 0x1b8   : > { %1441 = vmatmul.mubr.msk.bf16.gmra.mrb[20].mxu0 %vm795_vm2, %v1628_v40  ;;  %1459 = vmatmul.mubr.msk.bf16.gmra.mrb[20].mxu1 %vm795_vm2, %v1629_v41 }
 0x1b9   : > { %1470 = vmatprep.mubr.msk.bf16.mxu0 %vm1646_vm0, %v1645_v20  ;;  %1488 = vmatprep.mubr.msk.bf16.mxu1 %vm1646_vm0, %v1645_v20 }
 0x1c0   : > { %1471 = vmatmul.mubr.msk.bf16.vlgmr.msra.gmra.mrb[24].mxu0 %vm605_vm1, %v1789_v0 }
 0x1c1   : > { %1474 = vmatprep.mubr.msk.bf16.mxu0 %vm1646_vm0, %v1645_v20 }
 0x1c8   : > { %1475 = vmatmul.mubr.msk.bf16.gmra.mrb[28].mxu0 %vm605_vm1, %v1813_v61 }
 0x1c9   : > { %1478 = vmatprep.mubr.msk.bf16.mxu0 %vm1646_vm0, %v1645_v20 }
 0x1d0   : > { %1479 = vmatmul.mubr.msk.bf16.gmra.mrb[32].mxu0 %vm605_vm1, %v1829_v1 }
 0x27b   : > { %v839_v43 = vpop.f32.mrb[12].mxu0  ;;  %v920_v44 = vpop.f32.mrb[12].mxu1 }
 0x27c   : > { %v921_v45 = vadd.f32 %v920_v44, %v839_v43  ;;  %v1434_v48 = vpop.f32.mrb[13].mxu0  ;;  %v1452_v49 = vpop.f32.mrb[13].mxu1 }
 0x27d   : > { %v842_v50 = vpop.f32.mrb[14].mxu0  ;;  %v923_v51 = vpop.f32.mrb[14].mxu1 }
 0x27e   : > { %v924_v0 = vadd.f32 %v923_v51, %v842_v50  ;;  %v1435_v52 = vpop.f32.mrb[15].mxu0  ;;  %v1453_v53 = vpop.f32.mrb[15].mxu1 }
 0x283   : > { %v847_v54 = vpop.f32.mrb[16].mxu0  ;;  %v928_v55 = vpop.f32.mrb[16].mxu1 }
 0x284   : > { %v929_v47 = vadd.f32 %v928_v55, %v847_v54  ;;  %v1438_v61 = vpop.f32.mrb[17].mxu0  ;;  %v1456_v56 = vpop.f32.mrb[17].mxu1 }
 0x285   : > { %v850_v57 = vpop.f32.mrb[18].mxu0  ;;  %v931_v58 = vpop.f32.mrb[18].mxu1 }
 0x286   : > { %v932_v4 = vadd.f32 %v931_v58, %v850_v57  ;;  %v1439_v59 = vpop.f32.mrb[19].mxu0  ;;  %v1457_v60 = vpop.f32.mrb[19].mxu1 }
 0x28b   : > { %v855_v62 = vpop.f32.mrb[20].mxu0  ;;  %v936_v63 = vpop.f32.mrb[20].mxu1 }
 0x28c   : > { %v1906_v1 = vadd.f32 %v936_v63, %v855_v62  ;;  %v1442_v23 = vpop.f32.mrb[21].mxu0  ;;  %v1460_v2 = vpop.f32.mrb[21].mxu1 }
 0x28d   : > { %v858_v3 = vpop.f32.mrb[22].mxu0  ;;  %v939_v38 = vpop.f32.mrb[22].mxu1 }
 0x28e   : > { %v1908_v5 = vadd.f32 %v939_v38, %v858_v3  ;;  %v1443_v6 = vpop.f32.mrb[23].mxu0  ;;  %v1461_v7 = vpop.f32.mrb[23].mxu1 }
 0x293   : > { %v1009_v8 = vpop.f32.mrb[24].mxu0 }
 0x294   : > { %v1472_v9 = vpop.f32.mrb[25].mxu0 }
 0x295   : > { %v1012_v10 = vpop.f32.mrb[26].mxu0 }
 0x296   : > { %v1032_v11 = vpack.c.bf16 %v1012_v10, %v1009_v8  ;;  %v1473_v12 = vpop.f32.mrb[27].mxu0 }
 0x298   : > { %1483 = vmatpush3.bf16.msra.mxu1 %v1032_v11 }
 0x299   : > { %1484 = vmatprep.subr.bf16.mxu1 %v1645_v20 }
 0x29b   : > { %v1017_v13 = vpop.f32.mrb[28].mxu0 }
 0x29c   : > { %v1476_v14 = vpop.f32.mrb[29].mxu0 }
 0x29d   : > { %v1020_v15 = vpop.f32.mrb[30].mxu0 }
 0x29e   : > { %v1033_v16 = vpack.c.bf16 %v1020_v15, %v1017_v13  ;;  %v1477_v17 = vpop.f32.mrb[31].mxu0 }
 0x2a0   : > { %1485 = vmatpush3.bf16.msra.mxu1 %v1033_v16 }
 0x2a1   : > { %1486 = vmatprep.subr.bf16.mxu1 %v1645_v20 }
 0x2a3   : > { %v1025_v18 = vpop.f32.mrb[32].mxu0 }
 0x2a4   : > { %v1480_v19 = vpop.f32.mrb[33].mxu0 }
 0x2a5   : > { %v1028_v21 = vpop.f32.mrb[34].mxu0 }
 0x2a6   : > { %v1034_v22 = vpack.c.bf16 %v1028_v21, %v1025_v18  ;;  %v1481_v24 = vpop.f32.mrb[35].mxu0 }
 0x2a8   : > { %1487 = vmatpush3.bf16.msra.mxu1 %v1034_v22 }
 0x2ab   : > { %1489 = vmatmul.mubr.msk.bf16.vlgmr.msra.gmra.mrb[24].mxu1 %vm795_vm2, %v1632_v25 }
 0x2ac   : > { %1492 = vmatprep.mubr.msk.bf16.mxu1 %vm1646_vm0, %v1645_v20 }
 0x2b3   : > { %1493 = vmatmul.mubr.msk.bf16.gmra.mrb[28].mxu1 %vm795_vm2, %v1633_v26 }
 0x2b4   : > { %1496 = vmatprep.mubr.msk.bf16.mxu1 %vm1646_vm0, %v1645_v20 }
 0x2bb   : > { %1497 = vmatmul.mubr.msk.bf16.gmra.mrb[32].mxu1 %vm795_vm2, %v1634_v27 }
 0x37e   : > { %v1100_v28 = vpop.f32.mrb[24].mxu1 }
 0x37f   : > { %v1123_v30 = vadd.f32 %v1100_v28, %v921_v45  ;;  %v1490_v31 = vpop.f32.mrb[25].mxu1 }
 0x380   : > { %v1103_v32 = vpop.f32.mrb[26].mxu1 }
 0x381   : > { %v1136_v33 = vadd.f32 %v1287_v29, %v1123_v30  ;;  %v1124_v34 = vadd.f32 %v1103_v32, %v924_v0  ;;  %v1491_v35 = vpop.f32.mrb[27].mxu1 }
 0x383   : > { %v1137_v36 = vadd.f32 %v1287_v29, %v1124_v34  ;;  %v1142_v20 = vmax.f32 %v1136_v33, 0.0 }
 0x385   : > { %v1143_v42 = vmax.f32 %v1137_v36, 0.0 }
 0x386   : > { %v1108_v37 = vpop.f32.mrb[28].mxu1 }
 0x387   : > { %v1326_v46 = vpack.c.bf16 %v1143_v42, %v1142_v20  ;;  %v1125_v39 = vadd.f32 %v1108_v37, %v929_v47  ;;  %v1494_v40 = vpop.f32.mrb[29].mxu1 }
 0x388   : > { %v1111_v41 = vpop.f32.mrb[30].mxu1 }
 0x389   : > { %1327 = vst [vmem:[%s251_s10] sm:$0xff] %v1326_v46   ;;  %v1138_v43 = vadd.f32 %v1287_v29, %v1125_v39  ;;  %v1126_v44 = vadd.f32 %v1111_v41, %v932_v4  ;;  %v1495_v45 = vpop.f32.mrb[31].mxu1 }
 0x38b   : > { %v1139_v48 = vadd.f32 %v1287_v29, %v1126_v44  ;;  %v1144_v49 = vmax.f32 %v1138_v43, 0.0 }
 0x38d   : > { %v1145_v50 = vmax.f32 %v1139_v48, 0.0 }
 0x38e   : > { %v1116_v51 = vpop.f32.mrb[32].mxu1 }
 0x38f   : > { %v1331_v0 = vpack.c.bf16 %v1145_v50, %v1144_v49  ;;  %v1127_v52 = vadd.f32 %v1116_v51, %v1906_v1  ;;  %v1498_v53 = vpop.f32.mrb[33].mxu1 }
 0x390   : > { %v1119_v54 = vpop.f32.mrb[34].mxu1 }
 0x391   : > { %1345 = vst [vmem:[%s251_s10 + $0x8] sm:$0xff] %v1331_v0   ;;  %v1140_v55 = vadd.f32 %v1287_v29, %v1127_v52  ;;  %v1128_v61 = vadd.f32 %v1119_v54, %v1908_v5  ;;  %v1499_v47 = vpop.f32.mrb[35].mxu1 }
 0x393   : > { %v1141_v56 = vadd.f32 %v1287_v29, %v1128_v61  ;;  %v1146_v57 = vmax.f32 %v1140_v55, 0.0 }
 0x395   : > { %v1147_v58 = vmax.f32 %v1141_v56, 0.0 }
 0x397   : > { %v1336_v59 = vpack.c.bf16 %v1147_v58, %v1146_v57 }
 0x399   : > { %1346 = vst [vmem:[%s251_s10 + $0x10] sm:$0xff] %v1336_v59  }
 0x39a PF: > { %s16_s21 = sadd.s32 1, %s1641_s21  }
 0x39b   : > { %p13_p4 = scmp.ge.s32.totalorder %s16_s21, 4  }
 0x39d   :  { %15 = sbr.rel (!%p13_p4) target bundleno = 1 (0x1), region = 78 }

// kernel: gdlbe_forward.6
= control target key start
LH: loop header
LB: loop body
LE: loop exit
PB: predicated region body
PF: predicated region fallthrough
CT: control target
= control target key end

     0   :  { %s1597_s21 = smov 0   ;;  %s1770_s0 = inlined_call_operand.vmem [shape: bf16[2,6,8,128], index: 0, kind: input, shape index: {}]   ;;  %s1771_s1 = inlined_call_operand.vmem [shape: bf16[384,64], index: 1, kind: input, shape index: {}]   ;;  %s1772_s2 = inlined_call_operand.vmem [shape: f32[1,64], index: 2, kind: input, shape index: {}]   ;;  %s1773_s3 = inlined_call_operand.vmem [shape: bf16[3,32,32], index: 3, kind: input, shape index: {}]   ;;  %s1774_s4 = inlined_call_operand.vmem [shape: bf16[192,16], index: 4, kind: input, shape index: {}]   ;;  %s1775_s5 = inlined_call_operand.vmem [shape: f32[1,16], index: 5, kind: input, shape index: {}]   ;;  %s1776_s6 = inlined_call_operand.vmem [shape: bf16[2,4,8,16], index: 6, kind: output, shape index: {}]  }
   0x1 LB: > { %s1212_s22 = sadd.s32 4294967295, %s1560_s21   ;;  %p1216_p0 = scmp.ge.s32.totalorder %s1560_s21, 1  ;;  %s1560_s21 = sphi %s1597_s21, %s16_s21  }
   0x2   : > { %p212_p1 = scmp.lt.s32.totalorder %s1560_s21, 3 }
   0x4   : > { %p213_p2 = pnand %p1216_p0, %p212_p1 }
   0x5   : > { %v1506_v0 = vld [vmem:[%s1771_s1 + $0x40] sm:$0xff] (!%p213_p2)   ;;  %p242_p3 = scmp.lt.s32.totalorder (!%p213_p2), %s1212_s22, 1  ;;  %v1507_v1 = vld [vmem:[%s1771_s1 + $0x48] sm:$0xff] (!%p213_p2)   ;;  %v1508_v2 = vld [vmem:[%s1771_s1 + $0x50] sm:$0xff] (!%p213_p2)   ;;  %vm695_vm0 = vcmask (!%p213_p2), 523264   ;;  %vm855_vm1 = vcmask (!%p213_p2), 261120  }
   0x6   : > { %216 = sbr.rel (%p213_p2) target bundleno = 1040 (0x410), region = 44  ;;  %1361 = vmatprep.subr.bf16.mxu0 (!%p213_p2), %v1506_v0  ;;  %v1509_v3 = vld [vmem:[%s1771_s1 + $0x58] sm:$0xff] (!%p213_p2)   ;;  %v1510_v5 = vld [vmem:[%s1771_s1 + $0x60] sm:$0xff] (!%p213_p2)   ;;  %v1511_v6 = vld [vmem:[%s1771_s1 + $0x68] sm:$0xff] (!%p213_p2)   ;;  %vm1152_vm2 = vcmask (!%p213_p2), 125952  }
   0x7   : > { %1362 = vmatpush3.bf16.msra.mxu0 (!%p213_p2), %v1506_v0  ;;  %v1512_v7 = vld [vmem:[%s1771_s1 + $0x70] sm:$0xff] (!%p213_p2)   ;;  %v1513_v8 = vld [vmem:[%s1771_s1 + $0x78] sm:$0xff] (!%p213_p2)   ;;  %v1515_v9 = vld [vmem:[%s1771_s1] sm:$0xff] (!%p213_p2)  }
   0x8   : > { %1363 = vmatprep.subr.bf16.mxu0 (!%p213_p2), %v1507_v1  ;;  %v1517_v12 = vld [vmem:[%s1771_s1 + $0x8] sm:$0xff] (!%p213_p2)   ;;  %v1536_v13 = vld [vmem:[%s1774_s4] sm:$0xff] (!%p213_p2)   ;;  %v1518_v15 = vld [vmem:[%s1771_s1 + $0x10] sm:$0xff] (!%p213_p2)  }
   0x9   : > { %v1537_v14 = vld [vmem:[%s1774_s4 + $0x8] sm:$0xff] (!%p213_p2)   ;;  %1421 = vmatprep.subr.bf16.mxu1 (!%p213_p2), %v1536_v13  ;;  %v1519_v16 = vld [vmem:[%s1771_s1 + $0x18] sm:$0xff] (!%p213_p2)   ;;  %v1520_v17 = vld [vmem:[%s1771_s1 + $0x20] sm:$0xff] (!%p213_p2)  }
   0xa   : > { %1422 = vmatpush3.bf16.msra.mxu1 (!%p213_p2), %v1536_v13  ;;  %v1521_v18 = vld [vmem:[%s1771_s1 + $0x28] sm:$0xff] (!%p213_p2)   ;;  %v1522_v19 = vld [vmem:[%s1771_s1 + $0x30] sm:$0xff] (!%p213_p2)   ;;  %v1523_v20 = vld [vmem:[%s1771_s1 + $0x38] sm:$0xff] (!%p213_p2)  }
   0xb   : > { %1364 = vmatpush3.bf16.msra.mxu0 (!%p213_p2), %v1507_v1  ;;  %1423 = vmatprep.subr.bf16.mxu1 (!%p213_p2), %v1537_v14  ;;  %v1525_v21 = vld [vmem:[%s1771_s1 + $0x80] sm:$0xff] (!%p213_p2)   ;;  %v1527_v24 = vld [vmem:[%s1771_s1 + $0x88] sm:$0xff] (!%p213_p2)   ;;  %v1528_v25 = vld [vmem:[%s1771_s1 + $0x90] sm:$0xff] (!%p213_p2)  }
   0xc   : > { %1365 = vmatprep.subr.bf16.mxu0 (!%p213_p2), %v1508_v2  ;;  %v1529_v26 = vld [vmem:[%s1771_s1 + $0x98] sm:$0xff] (!%p213_p2)   ;;  %v1530_v27 = vld [vmem:[%s1771_s1 + $0xa0] sm:$0xff] (!%p213_p2)   ;;  %v1531_v28 = vld [vmem:[%s1771_s1 + $0xa8] sm:$0xff] (!%p213_p2)  }
   0xd   : > { %s1778_s22 = smov (!%p242_p3, %s1212_s22), 1  ;;  %v1532_v29 = vld [vmem:[%s1771_s1 + $0xb0] sm:$0xff]   ;;  %v1533_v30 = vld [vmem:[%s1771_s1 + $0xb8] sm:$0xff]   ;;  %v1540_v34 = vld [vmem:[%s1774_s4 + $0x20] sm:$0xff]  }
   0xe   : > { %s1497_s29 = smul.u32 24, %s1778_s22  ;;  %1424 = vmatpush3.bf16.msra.mxu1 %v1537_v14  ;;  %v1538_v32 = vld [vmem:[%s1774_s4 + $0x10] sm:$0xff]   ;;  %v1539_v33 = vld [vmem:[%s1774_s4 + $0x18] sm:$0xff]   ;;  %v1258_v35 = vld [vmem:[%s1772_s2] ss:$0 sm:$0xff]  ;;  %s1300_s28 = sshll.u32 %s1778_s22, 4 }
   0xf   : > { %1366 = vmatpush3.bf16.msra.mxu0 %v1508_v2  ;;  %1425 = vmatprep.subr.bf16.mxu1 %v1538_v32  ;;  %v1541_v50 = vld [vmem:[%s1774_s4 + $0x28] sm:$0xff]   ;;  %v1542_v51 = vld [vmem:[%s1774_s4 + $0x30] sm:$0xff]   ;;  %v1543_v52 = vld [vmem:[%s1774_s4 + $0x38] sm:$0xff]   ;;  %s251_s7 = scalar_lea.vmem %s1776_s6, %s1300_s28 }
  0x10   : > { %s1620_s8 = scalar_lea.vmem %s1770_s0, %s1497_s29  ;;  %1367 = vmatprep.subr.bf16.mxu0 %v1509_v3  ;;  %v1544_v53 = vld [vmem:[%s1773_s3 + $0x10] sm:$0xff]   ;;  %v1545_v2 = vld [vmem:[%s1773_s3 + $0x18] sm:$0xff]  }
  0x11   : > { %v1514_v4 = vld [vmem:[%s1620_s8 + $0x4] sm:$0xff]   ;;  %v1516_v10 = vld [vmem:[%s1620_s8 + $0xc] sm:$0xff]  }
  0x12   : > { %1377 = vmatprep.mubr.bf16.mxu0 %v1514_v4  ;;  %v1524_v11 = vld [vmem:[%s1620_s8] sm:$0xff]   ;;  %v1526_v22 = vld [vmem:[%s1620_s8 + $0x8] sm:$0xff]   ;;  %v1535_v31 = vld [vmem:[%s1620_s8 + $0x10] sm:$0xff]   ;;  %1426 = vmatpush3.bf16.msra.mxu1 %v1538_v32 }
  0x13   : > { %1368 = vmatpush3.bf16.msra.mxu0 %v1509_v3  ;;  %v1534_v23 = vld [vmem:[%s1620_s8 + $0x8] sm:$0xff]   ;;  %1427 = vmatprep.subr.bf16.mxu1 %v1539_v33  ;;  %v1546_v3 = vld [vmem:[%s1773_s3] sm:$0xff]  }
  0x14   : > { %1369 = vmatprep.subr.bf16.mxu0 %v1510_v5  ;;  %v1547_v4 = vld [vmem:[%s1774_s4 + $0x40] sm:$0xff]  }
  0x16   : > { %1428 = vmatpush3.bf16.msra.mxu1 %v1539_v33 }
  0x17   : > { %1370 = vmatpush3.bf16.msra.mxu0 %v1510_v5  ;;  %1433 = vmatprep.subr.bf16.mxu1 %v1540_v34  ;;  %v1548_v5 = vld [vmem:[%s1773_s3 + $0x8] sm:$0xff]  }
  0x18   : > { %1371 = vmatprep.subr.bf16.mxu0 %v1511_v6 }
  0x1b   : > { %1372 = vmatpush3.bf16.msra.mxu0 %v1511_v6  ;;  %v1549_v6 = vld [vmem:[%s1774_s4 + $0x48] sm:$0xff]  }
  0x1c   : > { %1373 = vmatprep.subr.bf16.mxu0 %v1512_v7 }
  0x1f   : > { %1374 = vmatpush3.bf16.msra.mxu0 %v1512_v7  ;;  %v1550_v7 = vld [vmem:[%s1774_s4 + $0x50] sm:$0xff]  }
  0x20   : > { %1375 = vmatprep.subr.bf16.mxu0 %v1513_v8 }
  0x23   : > { %1376 = vmatpush3.bf16.msra.mxu0 %v1513_v8  ;;  %v1551_v8 = vld [vmem:[%s1774_s4 + $0x58] sm:$0xff]  }
  0x24   : > { %1381 = vmatprep.subr.bf16.mxu0 %v1515_v9 }
  0x26   : > { %1378 = vmatmul.mubr.bf16.vlgmr.msra.gmra.mrb[0].mxu0 %v1516_v10 }
  0x27   : > { %1382 = vmatpush3.bf16.msra.mxu0 %v1515_v9  ;;  %1397 = vmatprep.mubr.bf16.mxu0 %v1524_v11  ;;  %v1552_v9 = vld [vmem:[%s1773_s3 + $0x20] sm:$0xff]  }
  0x28   : > { %1383 = vmatprep.subr.bf16.mxu0 %v1517_v12 }
  0x2b   : > { %1384 = vmatpush3.bf16.msra.mxu0 %v1517_v12 }
  0x2c   : > { %1385 = vmatprep.subr.bf16.mxu0 %v1518_v15 }
  0x2f   : > { %1386 = vmatpush3.bf16.msra.mxu0 %v1518_v15 }
  0x30   : > { %1387 = vmatprep.subr.bf16.mxu0 %v1519_v16 }
  0x33   : > { %1388 = vmatpush3.bf16.msra.mxu0 %v1519_v16  ;;  %v1553_v16 = vld [vmem:[%s1773_s3 + $0x28] sm:$0xff]  }
  0x34   : > { %1389 = vmatprep.subr.bf16.mxu0 %v1520_v17 }
  0x37   : > { %1390 = vmatpush3.bf16.msra.mxu0 %v1520_v17  ;;  %v1297_v17 = vld [vmem:[%s1775_s5] ss:$0 sm:$0xff] }
  0x38   : > { %1391 = vmatprep.subr.bf16.mxu0 %v1521_v18 }
  0x3b   : > { %1392 = vmatpush3.bf16.msra.mxu0 %v1521_v18 }
  0x3c   : > { %1393 = vmatprep.subr.bf16.mxu0 %v1522_v19 }
  0x3f   : > { %1394 = vmatpush3.bf16.msra.mxu0 %v1522_v19 }
  0x40   : > { %1395 = vmatprep.subr.bf16.mxu0 %v1523_v20 }
  0x43   : > { %1396 = vmatpush3.bf16.msra.mxu0 %v1523_v20 }
  0x44   : > { %1401 = vmatprep.subr.bf16.mxu0 %v1525_v21 }
  0x46   : > { %1398 = vmatmul.mubr.bf16.vlgmr.msra.gmra.mrb[0].mxu0 %v1526_v22 }
  0x47   : > { %1402 = vmatpush3.bf16.msra.mxu0 %v1525_v21  ;;  %1417 = vmatprep.mubr.bf16.mxu0 %v1534_v23 }
  0x48   : > { %1403 = vmatprep.subr.bf16.mxu0 %v1527_v24 }
  0x4b   : > { %1404 = vmatpush3.bf16.msra.mxu0 %v1527_v24 }
  0x4c   : > { %1405 = vmatprep.subr.bf16.mxu0 %v1528_v25 }
  0x4f   : > { %1406 = vmatpush3.bf16.msra.mxu0 %v1528_v25 }
  0x50   : > { %1407 = vmatprep.subr.bf16.mxu0 %v1529_v26 }
  0x53   : > { %1408 = vmatpush3.bf16.msra.mxu0 %v1529_v26 }
  0x54   : > { %1409 = vmatprep.subr.bf16.mxu0 %v1530_v27 }
  0x57   : > { %1410 = vmatpush3.bf16.msra.mxu0 %v1530_v27 }
  0x58   : > { %1411 = vmatprep.subr.bf16.mxu0 %v1531_v28 }
  0x5b   : > { %1412 = vmatpush3.bf16.msra.mxu0 %v1531_v28 }
  0x5c   : > { %1413 = vmatprep.subr.bf16.mxu0 %v1532_v29 }
  0x5f   : > { %1414 = vmatpush3.bf16.msra.mxu0 %v1532_v29 }
  0x60   : > { %1415 = vmatprep.subr.bf16.mxu0 %v1533_v30 }
  0x63   : > { %1416 = vmatpush3.bf16.msra.mxu0 %v1533_v30 }
  0x66   : > { %1418 = vmatmul.mubr.bf16.vlgmr.msra.gmra.mrb[0].mxu0 %v1535_v31 }
 0x139   : > { %v1419_v36 = vpop.f32.mrb[0].mxu0 }
 0x13a   : > { %v655_v37 = vadd.f32 %v1419_v36, %v1258_v35  ;;  %v627_v38 = vpop.f32.mrb[1].mxu0 }
 0x13b   : > { %v653_v39 = vadd.f32 %v1258_v35, %v627_v38  ;;  %v1420_v40 = vpop.f32.mrb[2].mxu0 }
 0x13c   : > { %v656_v41 = vadd.f32 %v1420_v40, %v1258_v35  ;;  %v630_v42 = vpop.f32.mrb[3].mxu0  ;;  %v659_v44 = vmax.f32 %v655_v37, 0.0 }
 0x13d   : > { %v654_v43 = vadd.f32 %v1258_v35, %v630_v42  ;;  %v657_v46 = vmax.f32 %v653_v39, 0.0 }
 0x13e   : > { %v660_v45 = vmax.f32 %v656_v41, 0.0 }
 0x13f   : > { %v658_v47 = vmax.f32 %v654_v43, 0.0 }
 0x140   : > { %v662_v48 = vpack.c.bf16 %v660_v45, %v659_v44 }
 0x141   : > { %v661_v49 = vpack.c.bf16 %v658_v47, %v657_v46 }
 0x143   : > { %1429 = vmatprep.mubr.msk.bf16.mxu1 %vm695_vm0, %v661_v49 }
 0x144   : > { %1430 = vmatmul.mubr.msk.bf16.vlgmr.msra.gmra.mrb[0].mxu1 %vm695_vm0, %v662_v48 }
 0x145   : > { %1434 = vmatpush3.bf16.msra.mxu1 %v1540_v34  ;;  %1441 = vmatprep.mubr.msk.bf16.mxu1 %vm695_vm0, %v661_v49 }
 0x146   : > { %1435 = vmatprep.subr.bf16.mxu1 %v1541_v50 }
 0x149   : > { %1436 = vmatpush3.bf16.msra.mxu1 %v1541_v50 }
 0x14a   : > { %1437 = vmatprep.subr.bf16.mxu1 %v1542_v51 }
 0x14d   : > { %1438 = vmatpush3.bf16.msra.mxu1 %v1542_v51 }
 0x14e   : > { %1439 = vmatprep.subr.bf16.mxu1 %v1543_v52 }
 0x151   : > { %1440 = vmatpush3.bf16.msra.mxu1 %v1543_v52 }
 0x154   : > { %1442 = vmatmul.mubr.msk.bf16.vlgmr.msra.gmra.mrb[4].mxu1 %vm695_vm0, %v662_v48 }
 0x155   : > { %1449 = vmatprep.mubr.msk.bf16.mxu1 %vm855_vm1, %v1544_v53 }
 0x217   : > { %v1431_v54 = vpop.f32.mrb[0].mxu1 }
 0x218   : > { %v736_v55 = vpop.f32.mrb[1].mxu1 }
 0x219   : > { %v1432_v56 = vpop.f32.mrb[2].mxu1 }
 0x21a   : > { %v752_v57 = vpack.c.bf16 %v1432_v56, %v1431_v54  ;;  %v739_v58 = vpop.f32.mrb[3].mxu1 }
 0x21b   : > { %v751_v59 = vpack.c.bf16 %v739_v58, %v736_v55 }
 0x227   : > { %v1443_v60 = vpop.f32.mrb[4].mxu1 }
 0x228   : > { %v823_v61 = vpop.f32.mrb[5].mxu1 }
 0x229   : > { %v1444_v62 = vpop.f32.mrb[6].mxu1 }
 0x22a   : > { %v839_v63 = vpack.c.bf16 %v1444_v62, %v1443_v60  ;;  %v826_v0 = vpop.f32.mrb[7].mxu1 }
 0x22b   : > { %v838_v1 = vpack.c.bf16 %v826_v0, %v823_v61 }
 0x22d   : > { %1445 = vmatprep.subr.bf16.mxu1 %v838_v1 }
 0x22e   : > { %1446 = vmatpush3.bf16.msra.mxu1 %v838_v1 }
 0x22f   : > { %1447 = vmatprep.subr.bf16.mxu1 %v839_v63 }
 0x232   : > { %1448 = vmatpush3.bf16.msra.mxu1 %v839_v63 }
 0x233   : > { %1453 = vmatprep.subr.bf16.mxu1 %v751_v59 }
 0x235   : > { %1450 = vmatmul.mubr.msk.bf16.vlgmr.msra.gmra.mrb[8].mxu1 %vm855_vm1, %v1545_v2 }
 0x236   : > { %1454 = vmatpush3.bf16.msra.mxu1 %v751_v59  ;;  %1457 = vmatprep.mubr.msk.bf16.mxu1 %vm855_vm1, %v1546_v3 }
 0x237   : > { %1455 = vmatprep.subr.bf16.mxu1 %v752_v57 }
 0x23a   : > { %1456 = vmatpush3.bf16.msra.mxu1 %v752_v57 }
 0x23b   : > { %1461 = vmatprep.subr.bf16.mxu1 %v1547_v4 }
 0x241   : > { %1458 = vmatmul.mubr.msk.bf16.vlgmr.msra.gmra.mrb[8].mxu1 %vm855_vm1, %v1548_v5 }
 0x242   : > { %1462 = vmatpush3.bf16.msra.mxu1 %v1547_v4  ;;  %1469 = vmatprep.mubr.msk.bf16.mxu1 %vm695_vm0, %v661_v49 }
 0x243   : > { %1463 = vmatprep.subr.bf16.mxu1 %v1549_v6 }
 0x246   : > { %1464 = vmatpush3.bf16.msra.mxu1 %v1549_v6 }
 0x247   : > { %1465 = vmatprep.subr.bf16.mxu1 %v1550_v7 }
 0x24a   : > { %1466 = vmatpush3.bf16.msra.mxu1 %v1550_v7 }
 0x24b   : > { %1467 = vmatprep.subr.bf16.mxu1 %v1551_v8 }
 0x24e   : > { %1468 = vmatpush3.bf16.msra.mxu1 %v1551_v8 }
 0x251   : > { %1470 = vmatmul.mubr.msk.bf16.vlgmr.msra.gmra.mrb[12].mxu1 %vm695_vm0, %v662_v48 }
 0x252   : > { %1477 = vmatprep.mubr.msk.bf16.mxu1 %vm855_vm1, %v1552_v9 }
 0x324   : > { %v1471_v10 = vpop.f32.mrb[12].mxu1 }
 0x325   : > { %v1042_v11 = vpop.f32.mrb[13].mxu1 }
 0x326   : > { %v1472_v12 = vpop.f32.mrb[14].mxu1 }
 0x327   : > { %v1058_v13 = vpack.c.bf16 %v1472_v12, %v1471_v10  ;;  %v1045_v14 = vpop.f32.mrb[15].mxu1 }
 0x328   : > { %v1057_v15 = vpack.c.bf16 %v1045_v14, %v1042_v11 }
 0x32a   : > { %1473 = vmatprep.subr.bf16.mxu1 %v1057_v15 }
 0x32b   : > { %1474 = vmatpush3.bf16.msra.mxu1 %v1057_v15 }
 0x32c   : > { %1475 = vmatprep.subr.bf16.mxu1 %v1058_v13 }
 0x32f   : > { %1476 = vmatpush3.bf16.msra.mxu1 %v1058_v13 }
 0x332   : > { %1478 = vmatmul.mubr.msk.bf16.vlgmr.msra.gmra.mrb[8].mxu1 %vm855_vm1, %v1553_v16 }
 0x405   : > { %v1479_v18 = vpop.f32.mrb[8].mxu1 }
 0x406   : > { %v1142_v19 = vadd.f32 %v1479_v18, %v1297_v17  ;;  %v1114_v20 = vpop.f32.mrb[9].mxu1 }
 0x407   : > { %v1140_v21 = vadd.f32 %v1297_v17, %v1114_v20  ;;  %v1480_v22 = vpop.f32.mrb[10].mxu1 }
 0x408   : > { %v1146_v23 = vmax.f32 %v1142_v19, 0.0  ;;  %v1143_v24 = vadd.f32 %v1480_v22, %v1297_v17  ;;  %v1117_v25 = vpop.f32.mrb[11].mxu1 }
 0x409   : > { %v1144_v26 = vmax.f32 %v1140_v21, 0.0  ;;  %v1141_v27 = vadd.f32 %v1297_v17, %v1117_v25 }
 0x40a   : > { %v1150_v28 = vpack.c.bf16 %v1146_v23, %v1146_v23  ;;  %v1147_v29 = vmax.f32 %v1143_v24, 0.0 }
 0x40b   : > { %v1148_v30 = vpack.c.bf16 %v1144_v26, %v1144_v26  ;;  %v1145_v31 = vmax.f32 %v1141_v27, 0.0 }
 0x40c   : > { %1155 = vst.msk [vmem:[%s251_s7 + $0x8] sm:$0xf] %vm1152_vm2, %v1150_v28  ;;  %v1151_v32 = vpack.c.bf16 %v1147_v29, %v1147_v29 }
 0x40d   : > { %1153 = vst.msk [vmem:[%s251_s7] sm:$0xf] %vm1152_vm2, %v1148_v30  ;;  %v1149_v33 = vpack.c.bf16 %v1145_v31, %v1145_v31 }
 0x40e   : > { %1156 = vst.msk [vmem:[%s251_s7 + $0xc] sm:$0xf] %vm1152_vm2, %v1151_v32 }
 0x40f   : > { %1154 = vst.msk [vmem:[%s251_s7 + $0x4] sm:$0xf] %vm1152_vm2, %v1149_v33 }
 0x410 PF: > { %s16_s21 = sadd.s32 1, %s1560_s21  }
 0x411   : > { %p13_p4 = scmp.ge.s32.totalorder %s16_s21, 4  }
 0x413   :  { %15 = sbr.rel (!%p13_p4) target bundleno = 1 (0x1), region = 78 }

// kernel: gdlbe_forward.9
= control target key start
LH: loop header
LB: loop body
LE: loop exit
PB: predicated region body
PF: predicated region fallthrough
CT: control target
= control target key end

     0   :  { %s686_s11 = smov 0   ;;  %s732_s0 = inlined_call_operand.vmem [shape: bf16[2,4,8,16], index: 0, kind: input, shape index: {}]   ;;  %s733_s1 = inlined_call_operand.vmem [shape: bf16[2,4,8,16], index: 1, kind: input, shape index: {}]   ;;  %s734_s2 = inlined_call_operand.vmem [shape: f32[2,1,8,3], index: 2, kind: input, shape index: {}]   ;;  %s735_s3 = inlined_call_operand.vmem [shape: f32[3,16], index: 3, kind: input, shape index: {}]   ;;  %s736_s4 = inlined_call_operand.vmem [shape: f32[1,16], index: 4, kind: input, shape index: {}]   ;;  %s737_s5 = inlined_call_operand.vmem [shape: f32[4,16], index: 5, kind: input, shape index: {}]   ;;  %s738_s6 = inlined_call_operand.vmem [shape: f32[4,16], index: 6, kind: input, shape index: {}]   ;;  %s739_s7 = inlined_call_operand.vmem [shape: f32[1,16], index: 7, kind: input, shape index: {}]   ;;  %s740_s8 = inlined_call_operand.<no memory space> [shape: f32[1,1], index: 8, kind: input, shape index: {}]   ;;  %s741_s9 = inlined_call_operand.vmem [shape: f32[2,8,1], index: 9, kind: output, shape index: {}]  }
   0x1   :  { %v14_v0 = vstv %s740_s8 }
   0x2   :  { %15 = vst [vmem:[#allocation2] sm:$0x1] %v14_v0 }
   0x3 LB: > { %s583_s12 = sadd.s32 4294967295, %s628_s11   ;;  %p587_p0 = scmp.ge.s32.totalorder %s628_s11, 1  ;;  %s628_s11 = sphi %s686_s11, %s21_s11  }
   0x4   : > { %p308_p1 = scmp.lt.s32.totalorder %s628_s11, 3 }
   0x6   : > { %p309_p2 = pnand %p587_p0, %p308_p1 }
   0x7   : > { %p352_p3 = scmp.lt.s32.totalorder (!%p309_p2), %s583_s12, 1  ;;  %v630_v1 = vmov (!%p309_p2), 0   ;;  %v631_v2 = vmov (!%p309_p2), 2   ;;  %v632_v4 = vmov (!%p309_p2), 1   ;;  %v385_v5 = vlaneseq (!%p309_p2)  ;;  %v371_v8 = vld [vmem:[%s735_s3] sm:$0x7] (!%p309_p2) }
   0x8   : > { %312 = sbr.rel (%p309_p2) target bundleno = 324 (0x144), region = 56  ;;  %618 = vset.pattern.permute.xlu0 (!%p309_p2), %v630_v1  ;;  %620 = vset.pattern.permute.xlu1 (!%p309_p2), %v631_v2  ;;  %v594_v16 = vld [vmem:[%s736_s4] ss:$0 sm:$0xff] (!%p309_p2)  ;;  %vm492_vm0 = vcmask (!%p309_p2), 130048   ;;  %vm504_vm1 = vcmask (!%p309_p2), 7168  }
   0x9   : > { %v386_v6 = vshrl.u32 (!%p309_p2), %v385_v5, 7  ;;  %v412_v18 = vld [vmem:[%s737_s5] sm:$0xf] (!%p309_p2) }
   0xa   : > { %v413_v25 = vld [vmem:[%s738_s6] sm:$0xf] (!%p309_p2) }
   0xb   : > { %v387_v7 = vsub.s32 (!%p309_p2), 0, %v386_v6  ;;  %v397_v10 = vsub.s32 (!%p309_p2), 1, %v386_v6  ;;  %v407_v11 = vsub.s32 (!%p309_p2), 2, %v386_v6  ;;  %v595_v33 = vld [vmem:[%s739_s7] ss:$0 sm:$0xff] (!%p309_p2)  ;;  %v479_v47 = vsub.s32 (!%p309_p2), 3, %v386_v6 }
   0xd   : > { %v388_v9 = vrot.slane (!%p309_p2), %v371_v8, %v387_v7  ;;  %v398_v14 = vrot.slane (!%p309_p2), %v371_v8, %v397_v10  ;;  %v408_v15 = vrot.slane (!%p309_p2), %v371_v8, %v407_v11  ;;  %v427_v27 = vrot.slane (!%p309_p2), %v412_v18, %v387_v7 }
   0xe   : > { %v435_v31 = vrot.slane (!%p309_p2), %v413_v25, %v387_v7  ;;  %v444_v35 = vrot.slane (!%p309_p2), %v412_v18, %v397_v10  ;;  %v453_v41 = vrot.slane (!%p309_p2), %v413_v25, %v397_v10  ;;  %v462_v44 = vrot.slane (!%p309_p2), %v412_v18, %v407_v11 }
   0xf   : > { %s743_s12 = smov (!%p352_p3, %s583_s12), 1  ;;  %v471_v51 = vrot.slane %v413_v25, %v407_v11  ;;  %v480_v55 = vrot.slane %v412_v18, %v479_v47  ;;  %v489_v59 = vrot.slane %v413_v25, %v479_v47 }
  0x10   : > { %s592_s8 = sshll.u32 %s743_s12, 3  ;;  %s605_s18 = sshll.u32 %s743_s12, 4 }
  0x11   : > { %s365_s15 = scalar_lea.vmem %s734_s2, %s592_s8  ;;  %s356_s21 = scalar_lea.vmem %s732_s0, %s605_s18 }
  0x12   : > { %v370_v3 = vld [vmem:[%s365_s15] sm:$0xff]  ;;  %s361_s26 = scalar_lea.vmem %s733_s1, %s605_s18  ;;  %s369_s16 = scalar_lea.vmem %s741_s9, %s592_s8 }
  0x13   : > { %382 = vperm.xlu0 %618, %v370_v3   ;;  %402 = vperm.xlu1 %620, %v370_v3   ;;  %v422_v20 = vld [vmem:[%s356_s21] ss:$12 sps:$4 sm:$0xff]   ;;  %v596_v29 = vld [vmem:[%s356_s21 + $0x4] sm:$0xff]  }
  0x14   : > { %v430_v24 = vld [vmem:[%s361_s26] sm:$0xff]   ;;  %v423_v28 = vunpack.c.l.bf16 %v422_v20  ;;  %v440_v34 = vunpack.c.l.bf16 %v596_v29  ;;  %v458_v42 = vunpack.c.h.bf16 %v596_v29  ;;  %v599_v43 = vld [vmem:[%s361_s26 + $0x8] sm:$0xff]   ;;  %v476_v54 = vunpack.c.h.bf16 %v422_v20 }
  0x15   : > { %v431_v30 = vunpack.c.l.bf16 %v430_v24  ;;  %v449_v38 = vunpack.c.h.bf16 %v430_v24  ;;  %v467_v50 = vunpack.c.l.bf16 %v599_v43  ;;  %v485_v58 = vunpack.c.h.bf16 %v599_v43 }
  0x16   : > { %v428_v37 = vmul.f32 %v427_v27, %v423_v28  ;;  %v445_v46 = vmul.f32 %v444_v35, %v440_v34  ;;  %v463_v53 = vmul.f32 %v462_v44, %v458_v42  ;;  %v481_v61 = vmul.f32 %v480_v55, %v476_v54 }
  0x17   : > { %619 = vset.pattern.permute.xlu0 %v632_v4  ;;  %v436_v40 = vmul.f32 %v435_v31, %v431_v30  ;;  %v454_v49 = vmul.f32 %v453_v41, %v449_v38  ;;  %v472_v57 = vmul.f32 %v471_v51, %v467_v50  ;;  %v490_v63 = vmul.f32 %v489_v59, %v485_v58 }
  0x18   : > { %392 = vperm.xlu0 %619, %v370_v3   ;;  %v602_v3 = vld [vmem:[#allocation2] ss:$0 sm:$0xff] }
  0x1c   : > { %621 = vset.pattern.permute.xlu0 %v631_v2 }
  0x92   : > { %v383_v12 = vpop.permute.xlu0 %382  ;;  %v403_v17 = vpop.permute.xlu1 %402 }
  0x93   : > { %v389_v13 = vmul.f32 %v388_v9, %v383_v12  ;;  %v409_v23 = vmul.f32 %v408_v15, %v403_v17 }
  0x95   : > { %v390_v21 = vadd.f32 %v594_v16, %v389_v13 }
  0x97   : > { %v393_v19 = vpop.permute.xlu0 %392 }
  0x98   : > { %v399_v22 = vmul.f32 %v398_v14, %v393_v19 }
  0x9a   : > { %v400_v26 = vadd.f32 %v399_v22, %v390_v21 }
  0x9c   : > { %v410_v32 = vadd.f32 %v409_v23, %v400_v26 }
  0x9e   : > { %v411_v36 = vmax.f32 %v410_v32, 0.0 }
  0xa0   : > { %v421_v39 = vmul.f32 %v595_v33, %v411_v36 }
  0xa2   : > { %v429_v45 = vadd.f32 %v428_v37, %v421_v39 }
  0xa4   : > { %v437_v48 = vadd.f32 %v436_v40, %v429_v45 }
  0xa6   : > { %v446_v52 = vadd.f32 %v445_v46, %v437_v48 }
  0xa8   : > { %v455_v56 = vadd.f32 %v454_v49, %v446_v52 }
  0xaa   : > { %v464_v60 = vadd.f32 %v463_v53, %v455_v56 }
  0xac   : > { %v473_v62 = vadd.f32 %v472_v57, %v464_v60 }
  0xae   : > { %v482_v0 = vadd.f32 %v481_v61, %v473_v62 }
  0xb0   : > { %v491_v1 = vadd.f32 %v490_v63, %v482_v0 }
  0xb2   : > { %v493_v2 = vsel %vm492_vm0, %v491_v1, 0.0 }
  0xb3   : > { %494 = vadd.xlane.f32.xlu1 %v493_v2 }
 0x140   : > { %v495_v4 = vpop.xlane.xlu1 %494 }
 0x141   : > { %v503_v5 = vadd.f32 %v602_v3, %v495_v4 }
 0x143   : > { %505 = vst.msk [vmem:[%s369_s16] sm:$0xff] %vm504_vm1, %v503_v5 }
 0x144 PF: > { %s21_s11 = sadd.s32 1, %s628_s11  }
 0x145   : > { %p18_p4 = scmp.ge.s32.totalorder %s21_s11, 4  }
 0x147   :  { %20 = sbr.rel (!%p18_p4) target bundleno = 3 (0x3), region = 98 }

</bundles_post_ra>
